<compile_context>
chip_gen: v6e
topology: v6e:2x2x1
jax: 0.10.0
libtpu: 0.0.40
codegen_flags: <defaults>
</compile_context>

<pallas_src>
import functools
import math

import jax
import jax.numpy as jnp
from jax.experimental import pallas as pl
from jax.experimental.pallas import tpu as pltpu

LN_EPS = 1e-5                       # PyTorch LayerNorm default eps
ROW_TILE = 256                      # rows per grid step (sweepable, multiple of 8)
VMEM_LIMIT_BYTES = 32 * 1024 * 1024  # explicit scoped-VMEM budget (fits v7x)


def _round_up(n, m):
    return ((n + m - 1) // m) * m


def _compiler_params(ndims=1):
    return pltpu.CompilerParams(
        dimension_semantics=("parallel",) * ndims,
        vmem_limit_bytes=VMEM_LIMIT_BYTES,
    )


# --------------------------------------------------------------------------
# Kernel bodies
# --------------------------------------------------------------------------
def _matmul_bias_kernel(x_ref, w_ref, b_ref, o_ref):
    """o = x @ W + b.  bf16 MXU operands, f32 accumulation."""
    x = x_ref[...].astype(jnp.bfloat16)
    acc = jnp.dot(x, w_ref[...], preferred_element_type=jnp.float32)
    o_ref[...] = (acc + b_ref[...]).astype(o_ref.dtype)


def _proj_add_ln_kernel(a_ref, w_ref, b_ref, res_ref, g_ref, beta_ref, o_ref):
    """o = LayerNorm(a @ Wo + bo + residual) * gamma + beta  (post-norm block)."""
    a = a_ref[...].astype(jnp.bfloat16)
    y = jnp.dot(a, w_ref[...], preferred_element_type=jnp.float32) + b_ref[...]
    y = y + res_ref[...]
    mean = jnp.mean(y, axis=-1, keepdims=True)
    c = y - mean
    var = jnp.mean(c * c, axis=-1, keepdims=True)
    inv = jax.lax.rsqrt(var + LN_EPS)
    o_ref[...] = (c * inv * g_ref[...] + beta_ref[...]).astype(o_ref.dtype)


def _ffn_add_ln_kernel(x_ref, w1_ref, b1_ref, w2_ref, b2_ref, g_ref, beta_ref, o_ref):
    """o = LayerNorm(linear2(relu(linear1(x))) + x) * gamma + beta."""
    x = x_ref[...]
    h = jnp.dot(x.astype(jnp.bfloat16), w1_ref[...],
                preferred_element_type=jnp.float32) + b1_ref[...]
    h = jnp.maximum(h, 0.0)                                   # ReLU (f32)
    y = jnp.dot(h.astype(jnp.bfloat16), w2_ref[...],
                preferred_element_type=jnp.float32) + b2_ref[...]
    y = y + x
    mean = jnp.mean(y, axis=-1, keepdims=True)
    c = y - mean
    var = jnp.mean(c * c, axis=-1, keepdims=True)
    inv = jax.lax.rsqrt(var + LN_EPS)
    o_ref[...] = (c * inv * g_ref[...] + beta_ref[...]).astype(o_ref.dtype)


def _mha_kernel(q_ref, k_ref, v_ref, o_ref, *, scale):
    """One (batch, head): softmax(Q K^T * scale) V  — full softmax (short seqs)."""
    q = q_ref[0].astype(jnp.bfloat16)          # (T, dh)
    k = k_ref[0].astype(jnp.bfloat16)          # (S, dh)
    v = v_ref[0].astype(jnp.bfloat16)          # (S, dh)
    s = jax.lax.dot_general(q, k, (((1,), (1,)), ((), ())),
                            preferred_element_type=jnp.float32) * scale   # (T, S)
    m = jnp.max(s, axis=-1, keepdims=True)
    p = jnp.exp(s - m)
    p = p / jnp.sum(p, axis=-1, keepdims=True)
    o = jnp.dot(p.astype(jnp.bfloat16), v, preferred_element_type=jnp.float32)
    o_ref[0] = o.astype(o_ref.dtype)


# --------------------------------------------------------------------------
# Pallas wrappers (row-tiled, weights VMEM-resident, remainder-safe)
# --------------------------------------------------------------------------
def _row_tiling(M):
    tm = min(ROW_TILE, _round_up(M, 8))
    Mp = _round_up(M, tm)
    return tm, Mp


def matmul_bias(x2, w, b):
    M, K = x2.shape
    N = w.shape[1]
    tm, Mp = _row_tiling(M)
    xp = jnp.pad(x2, ((0, Mp - M), (0, 0))) if Mp != M else x2
    out = pl.pallas_call(
        _matmul_bias_kernel,
        out_shape=jax.ShapeDtypeStruct((Mp, N), jnp.float32),
        grid=(Mp // tm,),
        in_specs=[
            pl.BlockSpec((tm, K), lambda i: (i, 0)),
            pl.BlockSpec((K, N), lambda i: (0, 0)),
            pl.BlockSpec((1, N), lambda i: (0, 0)),
        ],
        out_specs=pl.BlockSpec((tm, N), lambda i: (i, 0)),
        compiler_params=_compiler_params(),
    )(xp, w, b)
    return out[:M] if Mp != M else out


def proj_add_ln(a, w, b, res, gamma, beta):
    M, K = a.shape
    D = w.shape[1]
    tm, Mp = _row_tiling(M)
    if Mp != M:
        a = jnp.pad(a, ((0, Mp - M), (0, 0)))
        res = jnp.pad(res, ((0, Mp - M), (0, 0)))
    out = pl.pallas_call(
        _proj_add_ln_kernel,
        out_shape=jax.ShapeDtypeStruct((Mp, D), jnp.float32),
        grid=(Mp // tm,),
        in_specs=[
            pl.BlockSpec((tm, K), lambda i: (i, 0)),   # attention output
            pl.BlockSpec((K, D), lambda i: (0, 0)),    # Wo (resident)
            pl.BlockSpec((1, D), lambda i: (0, 0)),    # bo
            pl.BlockSpec((tm, D), lambda i: (i, 0)),   # residual
            pl.BlockSpec((1, D), lambda i: (0, 0)),    # LN gamma
            pl.BlockSpec((1, D), lambda i: (0, 0)),    # LN beta
        ],
        out_specs=pl.BlockSpec((tm, D), lambda i: (i, 0)),
        compiler_params=_compiler_params(),
    )(a, w, b, res, gamma, beta)
    return out[:M] if Mp != M else out


def ffn_add_ln(x2, w1, b1, w2, b2, gamma, beta):
    M, D = x2.shape
    FF = w1.shape[1]
    tm, Mp = _row_tiling(M)
    xp = jnp.pad(x2, ((0, Mp - M), (0, 0))) if Mp != M else x2
    out = pl.pallas_call(
        _ffn_add_ln_kernel,
        out_shape=jax.ShapeDtypeStruct((Mp, D), jnp.float32),
        grid=(Mp // tm,),
        in_specs=[
            pl.BlockSpec((tm, D), lambda i: (i, 0)),
            pl.BlockSpec((D, FF), lambda i: (0, 0)),
            pl.BlockSpec((1, FF), lambda i: (0, 0)),
            pl.BlockSpec((FF, D), lambda i: (0, 0)),
            pl.BlockSpec((1, D), lambda i: (0, 0)),
            pl.BlockSpec((1, D), lambda i: (0, 0)),
            pl.BlockSpec((1, D), lambda i: (0, 0)),
        ],
        out_specs=pl.BlockSpec((tm, D), lambda i: (i, 0)),
        compiler_params=_compiler_params(),
    )(xp, w1, b1, w2, b2, gamma, beta)
    return out[:M] if Mp != M else out


def mha(q, k, v, scale):
    BH, T, dh = q.shape
    S = k.shape[1]
    return pl.pallas_call(
        functools.partial(_mha_kernel, scale=scale),
        out_shape=jax.ShapeDtypeStruct((BH, T, dh), jnp.float32),
        grid=(BH,),
        in_specs=[
            pl.BlockSpec((1, T, dh), lambda i: (i, 0, 0)),
            pl.BlockSpec((1, S, dh), lambda i: (i, 0, 0)),
            pl.BlockSpec((1, S, dh), lambda i: (i, 0, 0)),
        ],
        out_specs=pl.BlockSpec((1, T, dh), lambda i: (i, 0, 0)),
        compiler_params=_compiler_params(),
    )(q, k, v)


# --------------------------------------------------------------------------
# Head split / merge glue (pure JAX, shared by kernel path and reference)
# --------------------------------------------------------------------------
def _split_heads(x2, batch, seq, num_heads):
    d = x2.shape[-1]
    dh = d // num_heads
    return (x2.reshape(batch, seq, num_heads, dh)
              .transpose(0, 2, 1, 3)
              .reshape(batch * num_heads, seq, dh))


def _merge_heads(o, batch, seq, d_model):
    num_heads = o.shape[0] // batch
    dh = o.shape[-1]
    return (o.reshape(batch, num_heads, seq, dh)
             .transpose(0, 2, 1, 3)
             .reshape(batch * seq, d_model))


# --------------------------------------------------------------------------
# Full decoder forward (Pallas hot path, JAX layout glue)
# --------------------------------------------------------------------------
def transformer_decoder_forward(tgt, memory, params, *, num_heads):
    """tgt: (T, B, D), memory: (S, B, D)  ->  (T, B, D)   (PyTorch layout)."""
    T, B, D = tgt.shape
    S = memory.shape[0]
    dh = D // num_heads
    scale = 1.0 / math.sqrt(dh)

    x = jnp.transpose(tgt, (1, 0, 2)).reshape(B * T, D)        # batch-major rows
    mem = jnp.transpose(memory, (1, 0, 2)).reshape(B * S, D)

    for p in params:
        # ---- self-attention block ----
        qkv = matmul_bias(x, p["w_qkv"], p["b_qkv"])           # (M, 3D)
        q = _split_heads(qkv[:, :D], B, T, num_heads)
        k = _split_heads(qkv[:, D:2 * D], B, T, num_heads)
        v = _split_heads(qkv[:, 2 * D:], B, T, num_heads)
        attn = _merge_heads(mha(q, k, v, scale), B, T, D)
        x = proj_add_ln(attn, p["w_o_self"], p["b_o_self"], x,
                        p["ln1_g"], p["ln1_b"])

        # ---- cross-attention block ----
        qx = _split_heads(matmul_bias(x, p["w_q_x"], p["b_q_x"]), B, T, num_heads)
        kvx = matmul_bias(mem, p["w_kv_x"], p["b_kv_x"])       # (Mm, 2D)
        kx = _split_heads(kvx[:, :D], B, S, num_heads)
        vx = _split_heads(kvx[:, D:], B, S, num_heads)
        attn = _merge_heads(mha(qx, kx, vx, scale), B, T, D)
        x = proj_add_ln(attn, p["w_o_x"], p["b_o_x"], x,
                        p["ln2_g"], p["ln2_b"])

        # ---- feed-forward block ----
        x = ffn_add_ln(x, p["w_ff1"], p["b_ff1"], p["w_ff2"], p["b_ff2"],
                       p["ln3_g"], p["ln3_b"])

    return jnp.transpose(x.reshape(B, T, D), (1, 0, 2))


# --------------------------------------------------------------------------
# Parameter init (weights pre-transposed to (in, out), stored bf16 for the MXU)
# --------------------------------------------------------------------------
def init_decoder_params(key, d_model, num_layers, ff_dim):
    def linear(k, fan_in, fan_out):
        kw, kb = jax.random.split(k)
        bound = 1.0 / math.sqrt(fan_in)
        w = jax.random.uniform(kw, (fan_in, fan_out), jnp.float32, -bound, bound)
        b = jax.random.uniform(kb, (1, fan_out), jnp.float32, -bound, bound)
        return w.astype(jnp.bfloat16), b

    params = []
    for _ in range(num_layers):
        key, k1, k2, k3, k4, k5, k6, k7 = jax.random.split(key, 8)
        w_qkv, b_qkv = linear(k1, d_model, 3 * d_model)
        w_os, b_os = linear(k2, d_model, d_model)
        w_qx, b_qx = linear(k3, d_model, d_model)
        w_kvx, b_kvx = linear(k4, d_model, 2 * d_model)
        w_ox, b_ox = linear(k5, d_model, d_model)
        w_ff1, b_ff1 = linear(k6, d_model, ff_dim)
        w_ff2, b_ff2 = linear(k7, ff_dim, d_model)
        ones = jnp.ones((1, d_model), jnp.float32)
        zeros = jnp.zeros((1, d_model), jnp.float32)
        params.append(dict(
            w_qkv=w_qkv, b_qkv=b_qkv, w_o_self=w_os, b_o_self=b_os,
            w_q_x=w_qx, b_q_x=b_qx, w_kv_x=w_kvx, b_kv_x=b_kvx,
            w_o_x=w_ox, b_o_x=b_ox,
            w_ff1=w_ff1, b_ff1=b_ff1, w_ff2=w_ff2, b_ff2=b_ff2,
            ln1_g=ones, ln1_b=zeros, ln2_g=ones, ln2_b=zeros,
            ln3_g=ones, ln3_b=zeros,
        ))
    return params


# --------------------------------------------------------------------------
# Pure-JAX reference (mirrors kernel dtype behavior: bf16 MXU operands, f32 rest)
# --------------------------------------------------------------------------
def _ref_linear(x, w, b):
    return jnp.dot(x.astype(jnp.bfloat16), w, preferred_element_type=jnp.float32) + b


def _ref_layernorm(y, g, beta):
    mean = jnp.mean(y, -1, keepdims=True)
    c = y - mean
    var = jnp.mean(c * c, -1, keepdims=True)
    return c * jax.lax.rsqrt(var + LN_EPS) * g + beta


def _ref_mha(q, k, v, scale):
    s = jnp.einsum("btd,bsd->bts", q.astype(jnp.bfloat16), k.astype(jnp.bfloat16),
                   preferred_element_type=jnp.float32) * scale
    m = jnp.max(s, -1, keepdims=True)
    p = jnp.exp(s - m)
    p = p / jnp.sum(p, -1, keepdims=True)
    return jnp.einsum("bts,bsd->btd", p.astype(jnp.bfloat16), v.astype(jnp.bfloat16),
                      preferred_element_type=jnp.float32)


def transformer_decoder_reference(tgt, memory, params, *, num_heads):
    T, B, D = tgt.shape
    S = memory.shape[0]
    dh = D // num_heads
    scale = 1.0 / math.sqrt(dh)
    x = jnp.transpose(tgt, (1, 0, 2)).reshape(B * T, D)
    mem = jnp.transpose(memory, (1, 0, 2)).reshape(B * S, D)
    for p in params:
        qkv = _ref_linear(x, p["w_qkv"], p["b_qkv"])
        q = _split_heads(qkv[:, :D], B, T, num_heads)
        k = _split_heads(qkv[:, D:2 * D], B, T, num_heads)
        v = _split_heads(qkv[:, 2 * D:], B, T, num_heads)
        attn = _merge_heads(_ref_mha(q, k, v, scale), B, T, D)
        x = _ref_layernorm(_ref_linear(attn, p["w_o_self"], p["b_o_self"]) + x,
                           p["ln1_g"], p["ln1_b"])
        qx = _split_heads(_ref_linear(x, p["w_q_x"], p["b_q_x"]), B, T, num_heads)
        kvx = _ref_linear(mem, p["w_kv_x"], p["b_kv_x"])
        kx = _split_heads(kvx[:, :D], B, S, num_heads)
        vx = _split_heads(kvx[:, D:], B, S, num_heads)
        attn = _merge_heads(_ref_mha(qx, kx, vx, scale), B, T, D)
        x = _ref_layernorm(_ref_linear(attn, p["w_o_x"], p["b_o_x"]) + x,
                           p["ln2_g"], p["ln2_b"])
        h = jnp.maximum(_ref_linear(x, p["w_ff1"], p["b_ff1"]), 0.0)
        x = _ref_layernorm(_ref_linear(h, p["w_ff2"], p["b_ff2"]) + x,
                           p["ln3_g"], p["ln3_b"])
    return jnp.transpose(x.reshape(B, T, D), (1, 0, 2))


if __name__ == "__main__":
    # Small shapes, structurally consistent with the module (d_model divisible by
    # heads, lane-dense feature dims). Production config is 1024/16/4096/12.
    T, S, B = 8, 16, 2          # tgt len, memory len, batch
    D, H, FF, L = 128, 4, 256, 2

    key = jax.random.PRNGKey(0)
    k1, k2, k3 = jax.random.split(key, 3)
    tgt = jax.random.normal(k1, (T, B, D), jnp.float32)
    memory = jax.random.normal(k2, (S, B, D), jnp.float32)
    params = init_decoder_params(k3, D, L, FF)

    fwd = jax.jit(functools.partial(transformer_decoder_forward, num_heads=H))
    out = jax.block_until_ready(fwd(tgt, memory, params))

    ref = transformer_decoder_reference(tgt, memory, params, num_heads=H)
    assert out.shape == (T, B, D), out.shape
    max_err = float(jnp.max(jnp.abs(out - ref)))
    assert jnp.allclose(out, ref, atol=5e-3, rtol=5e-3), f"mismatch vs reference: {max_err}"

    print("KERNEL_OK")
</pallas_src>

<mosaic_0001>
module attributes {stable_mosaic.version = 11 : i64} {
  func.func @_matmul_bias_kernel(%arg0: i32, %arg1: memref<16x128xf32, #tpu.memory_space<vmem>>, %arg2: memref<128x384xbf16, #tpu.memory_space<vmem>>, %arg3: memref<1x384xf32, #tpu.memory_space<vmem>>, %arg4: memref<16x384xf32, #tpu.memory_space<vmem>>) attributes {dimension_semantics = [#tpu.dimension_semantics<parallel>], iteration_bounds = array<i64: 1>, scalar_prefetch = 0 : i64, scratch_operands = 0 : i64, tpu.core_type = #tpu.core_type<tc>, window_params = [{transform_indices = @transform_0, window_bounds = array<i64: 16, 128>}, {pipeline_mode = #tpu.pipeline_mode<synchronous>, transform_indices = @transform_1, window_bounds = array<i64: 128, 384>}, {pipeline_mode = #tpu.pipeline_mode<synchronous>, transform_indices = @transform_2, window_bounds = array<i64: 1, 384>}, {transform_indices = @transform_3, window_bounds = array<i64: 16, 384>}]} {
    %c0 = arith.constant 0 : index
    %c0_0 = arith.constant 0 : index
    %0 = vector.load %arg1[%c0, %c0_0] : memref<16x128xf32, #tpu.memory_space<vmem>>, vector<16x128xf32>
    %1 = arith.truncf %0 : vector<16x128xf32> to vector<16x128xbf16>
    %c0_1 = arith.constant 0 : index
    %c0_2 = arith.constant 0 : index
    %2 = vector.load %arg2[%c0_1, %c0_2] : memref<128x384xbf16, #tpu.memory_space<vmem>>, vector<128x384xbf16>
    %cst = arith.constant dense<0.000000e+00> : vector<16x384xf32>
    %3 = tpu.matmul %1, %2, %cst {dimension_numbers = #tpu.dot_dimension_numbers<[1], [0], [0], [1], [0, 0, 1, 1], [], []>} : vector<16x128xbf16>, vector<128x384xbf16>, vector<16x384xf32> -> vector<16x384xf32>
    %c0_3 = arith.constant 0 : index
    %c0_4 = arith.constant 0 : index
    %4 = vector.load %arg3[%c0_3, %c0_4] : memref<1x384xf32, #tpu.memory_space<vmem>>, vector<1x384xf32>
    %5 = vector.broadcast %4 : vector<1x384xf32> to vector<16x384xf32>
    %6 = arith.addf %3, %5 : vector<16x384xf32>
    %c0_5 = arith.constant 0 : index
    %c0_6 = arith.constant 0 : index
    %7 = vector.load %arg4[%c0_5, %c0_6] : memref<16x384xf32, #tpu.memory_space<vmem>>, vector<16x384xf32>
    tpu.vector_store %arg4[%c0_5, %c0_6], %6 {strides = array<i32>} : memref<16x384xf32, #tpu.memory_space<vmem>>, vector<16x384xf32>,
    return
  }
  func.func @transform_0(%arg0: i32) -> (i32, i32) {
    %c0_i32 = arith.constant 0 : i32
    %c0_i32_0 = arith.constant 0 : i32
    return %arg0, %c0_i32 : i32, i32
  }
  func.func @transform_1(%arg0: i32) -> (i32, i32) {
    %c0_i32 = arith.constant 0 : i32
    %c0_i32_0 = arith.constant 0 : i32
    %c0_i32_1 = arith.constant 0 : i32
    return %c0_i32, %c0_i32_0 : i32, i32
  }
  func.func @transform_2(%arg0: i32) -> (i32, i32) {
    %c0_i32 = arith.constant 0 : i32
    %c0_i32_0 = arith.constant 0 : i32
    %c0_i32_1 = arith.constant 0 : i32
    return %c0_i32, %c0_i32_0 : i32, i32
  }
  func.func @transform_3(%arg0: i32) -> (i32, i32) {
    %c0_i32 = arith.constant 0 : i32
    %c0_i32_0 = arith.constant 0 : i32
    return %arg0, %c0_i32 : i32, i32
  }
}

module attributes {stable_mosaic.version = 11 : i64} {
  func.func @_proj_add_ln_kernel(%arg0: i32, %arg1: memref<16x128xf32, #tpu.memory_space<vmem>>, %arg2: memref<128x128xbf16, #tpu.memory_space<vmem>>, %arg3: memref<1x128xf32, #tpu.memory_space<vmem>>, %arg4: memref<16x128xf32, #tpu.memory_space<vmem>>, %arg5: memref<1x128xf32, #tpu.memory_space<vmem>>, %arg6: memref<1x128xf32, #tpu.memory_space<vmem>>, %arg7: memref<16x128xf32, #tpu.memory_space<vmem>>) attributes {dimension_semantics = [#tpu.dimension_semantics<parallel>], iteration_bounds = array<i64: 1>, scalar_prefetch = 0 : i64, scratch_operands = 0 : i64, tpu.core_type = #tpu.core_type<tc>, window_params = [{transform_indices = @transform_0, window_bounds = array<i64: 16, 128>}, {pipeline_mode = #tpu.pipeline_mode<synchronous>, transform_indices = @transform_1, window_bounds = array<i64: 128, 128>}, {pipeline_mode = #tpu.pipeline_mode<synchronous>, transform_indices = @transform_2, window_bounds = array<i64: 1, 128>}, {transform_indices = @transform_3, window_bounds = array<i64: 16, 128>}, {pipeline_mode = #tpu.pipeline_mode<synchronous>, transform_indices = @transform_4, window_bounds = array<i64: 1, 128>}, {pipeline_mode = #tpu.pipeline_mode<synchronous>, transform_indices = @transform_5, window_bounds = array<i64: 1, 128>}, {transform_indices = @transform_6, window_bounds = array<i64: 16, 128>}]} {
    %c0 = arith.constant 0 : index
    %c0_0 = arith.constant 0 : index
    %0 = vector.load %arg1[%c0, %c0_0] : memref<16x128xf32, #tpu.memory_space<vmem>>, vector<16x128xf32>
    %1 = arith.truncf %0 : vector<16x128xf32> to vector<16x128xbf16>
    %c0_1 = arith.constant 0 : index
    %c0_2 = arith.constant 0 : index
    %2 = vector.load %arg2[%c0_1, %c0_2] : memref<128x128xbf16, #tpu.memory_space<vmem>>, vector<128x128xbf16>
    %cst = arith.constant dense<0.000000e+00> : vector<16x128xf32>
    %3 = tpu.matmul %1, %2, %cst {dimension_numbers = #tpu.dot_dimension_numbers<[1], [0], [0], [1], [0, 0, 1, 1], [], []>} : vector<16x128xbf16>, vector<128x128xbf16>, vector<16x128xf32> -> vector<16x128xf32>
    %c0_3 = arith.constant 0 : index
    %c0_4 = arith.constant 0 : index
    %4 = vector.load %arg3[%c0_3, %c0_4] : memref<1x128xf32, #tpu.memory_space<vmem>>, vector<1x128xf32>
    %5 = vector.broadcast %4 : vector<1x128xf32> to vector<16x128xf32>
    %6 = arith.addf %3, %5 : vector<16x128xf32>
    %c0_5 = arith.constant 0 : index
    %c0_6 = arith.constant 0 : index
    %7 = vector.load %arg4[%c0_5, %c0_6] : memref<16x128xf32, #tpu.memory_space<vmem>>, vector<16x128xf32>
    %8 = arith.addf %6, %7 : vector<16x128xf32>
    %cst_7 = arith.constant dense<0.000000e+00> : vector<16xf32>
    %9 = vector.multi_reduction <add>, %8, %cst_7 [1] : vector<16x128xf32> to vector<16xf32>
    %10 = vector.shape_cast %9 : vector<16xf32> to vector<16x1xf32>
    %cst_8 = arith.constant 1.280000e+02 : f32
    %11 = vector.broadcast %cst_8 : f32 to vector<16x1xf32>
    %12 = arith.divf %10, %11 : vector<16x1xf32>
    %13 = vector.broadcast %12 : vector<16x1xf32> to vector<16x128xf32>
    %14 = arith.subf %8, %13 : vector<16x128xf32>
    %15 = arith.mulf %14, %14 : vector<16x128xf32>
    %cst_9 = arith.constant dense<0.000000e+00> : vector<16xf32>
    %16 = vector.multi_reduction <add>, %15, %cst_9 [1] : vector<16x128xf32> to vector<16xf32>
    %17 = vector.shape_cast %16 : vector<16xf32> to vector<16x1xf32>
    %cst_10 = arith.constant 1.280000e+02 : f32
    %18 = vector.broadcast %cst_10 : f32 to vector<16x1xf32>
    %19 = arith.divf %17, %18 : vector<16x1xf32>
    %cst_11 = arith.constant 9.99999974E-6 : f32
    %20 = vector.broadcast %cst_11 : f32 to vector<16x1xf32>
    %21 = arith.addf %19, %20 : vector<16x1xf32>
    %22 = math.rsqrt %21 : vector<16x1xf32>
    %23 = vector.broadcast %22 : vector<16x1xf32> to vector<16x128xf32>
    %24 = arith.mulf %14, %23 : vector<16x128xf32>
    %c0_12 = arith.constant 0 : index
    %c0_13 = arith.constant 0 : index
    %25 = vector.load %arg5[%c0_12, %c0_13] : memref<1x128xf32, #tpu.memory_space<vmem>>, vector<1x128xf32>
    %26 = vector.broadcast %25 : vector<1x128xf32> to vector<16x128xf32>
    %27 = arith.mulf %24, %26 : vector<16x128xf32>
    %c0_14 = arith.constant 0 : index
    %c0_15 = arith.constant 0 : index
    %28 = vector.load %arg6[%c0_14, %c0_15] : memref<1x128xf32, #tpu.memory_space<vmem>>, vector<1x128xf32>
    %29 = vector.broadcast %28 : vector<1x128xf32> to vector<16x128xf32>
    %30 = arith.addf %27, %29 : vector<16x128xf32>
    %c0_16 = arith.constant 0 : index
    %c0_17 = arith.constant 0 : index
    %31 = vector.load %arg7[%c0_16, %c0_17] : memref<16x128xf32, #tpu.memory_space<vmem>>, vector<16x128xf32>
    tpu.vector_store %arg7[%c0_16, %c0_17], %30 {strides = array<i32>} : memref<16x128xf32, #tpu.memory_space<vmem>>, vector<16x128xf32>,
    return
  }
  func.func @transform_0(%arg0: i32) -> (i32, i32) {
    %c0_i32 = arith.constant 0 : i32
    %c0_i32_0 = arith.constant 0 : i32
    return %arg0, %c0_i32 : i32, i32
  }
  func.func @transform_1(%arg0: i32) -> (i32, i32) {
    %c0_i32 = arith.constant 0 : i32
    %c0_i32_0 = arith.constant 0 : i32
    %c0_i32_1 = arith.constant 0 : i32
    return %c0_i32, %c0_i32_0 : i32, i32
  }
  func.func @transform_2(%arg0: i32) -> (i32, i32) {
    %c0_i32 = arith.constant 0 : i32
    %c0_i32_0 = arith.constant 0 : i32
    %c0_i32_1 = arith.constant 0 : i32
    return %c0_i32, %c0_i32_0 : i32, i32
  }
  func.func @transform_3(%arg0: i32) -> (i32, i32) {
    %c0_i32 = arith.constant 0 : i32
    %c0_i32_0 = arith.constant 0 : i32
    return %arg0, %c0_i32 : i32, i32
  }
  func.func @transform_4(%arg0: i32) -> (i32, i32) {
    %c0_i32 = arith.constant 0 : i32
    %c0_i32_0 = arith.constant 0 : i32
    %c0_i32_1 = arith.constant 0 : i32
    return %c0_i32, %c0_i32_0 : i32, i32
  }
  func.func @transform_5(%arg0: i32) -> (i32, i32) {
    %c0_i32 = arith.constant 0 : i32
    %c0_i32_0 = arith.constant 0 : i32
    %c0_i32_1 = arith.constant 0 : i32
    return %c0_i32, %c0_i32_0 : i32, i32
  }
  func.func @transform_6(%arg0: i32) -> (i32, i32) {
    %c0_i32 = arith.constant 0 : i32
    %c0_i32_0 = arith.constant 0 : i32
    return %arg0, %c0_i32 : i32, i32
  }
}

module attributes {stable_mosaic.version = 11 : i64} {
  func.func @_mha_kernel(%arg0: i32, %arg1: memref<1x8x32xf32, #tpu.memory_space<vmem>>, %arg2: memref<1x8x32xf32, #tpu.memory_space<vmem>>, %arg3: memref<1x8x32xf32, #tpu.memory_space<vmem>>, %arg4: memref<1x8x32xf32, #tpu.memory_space<vmem>>) attributes {dimension_semantics = [#tpu.dimension_semantics<parallel>], iteration_bounds = array<i64: 8>, scalar_prefetch = 0 : i64, scratch_operands = 0 : i64, tpu.core_type = #tpu.core_type<tc>, window_params = [{transform_indices = @transform_0, window_bounds = array<i64: 1, 8, 32>}, {transform_indices = @transform_1, window_bounds = array<i64: 1, 8, 32>}, {transform_indices = @transform_2, window_bounds = array<i64: 1, 8, 32>}, {transform_indices = @transform_3, window_bounds = array<i64: 1, 8, 32>}]} {
    %c0 = arith.constant 0 : index
    %c0_0 = arith.constant 0 : index
    %c0_1 = arith.constant 0 : index
    %0 = vector.load %arg1[%c0, %c0_0, %c0_1] : memref<1x8x32xf32, #tpu.memory_space<vmem>>, vector<1x8x32xf32>
    %1 = vector.shape_cast %0 : vector<1x8x32xf32> to vector<8x32xf32>
    %2 = arith.truncf %1 : vector<8x32xf32> to vector<8x32xbf16>
    %c0_2 = arith.constant 0 : index
    %c0_3 = arith.constant 0 : index
    %c0_4 = arith.constant 0 : index
    %3 = vector.load %arg2[%c0_2, %c0_3, %c0_4] : memref<1x8x32xf32, #tpu.memory_space<vmem>>, vector<1x8x32xf32>
    %4 = vector.shape_cast %3 : vector<1x8x32xf32> to vector<8x32xf32>
    %5 = arith.truncf %4 : vector<8x32xf32> to vector<8x32xbf16>
    %c0_5 = arith.constant 0 : index
    %c0_6 = arith.constant 0 : index
    %c0_7 = arith.constant 0 : index
    %6 = vector.load %arg3[%c0_5, %c0_6, %c0_7] : memref<1x8x32xf32, #tpu.memory_space<vmem>>, vector<1x8x32xf32>
    %7 = vector.shape_cast %6 : vector<1x8x32xf32> to vector<8x32xf32>
    %8 = arith.truncf %7 : vector<8x32xf32> to vector<8x32xbf16>
    %cst = arith.constant dense<0.000000e+00> : vector<8x8xf32>
    %9 = tpu.matmul %2, %5, %cst {dimension_numbers = #tpu.dot_dimension_numbers<[1], [1], [0], [0], [0, 0, 1, 0], [], []>} : vector<8x32xbf16>, vector<8x32xbf16>, vector<8x8xf32> -> vector<8x8xf32>
    %cst_8 = arith.constant 0.176776692 : f32
    %10 = vector.broadcast %cst_8 : f32 to vector<8x8xf32>
    %11 = arith.mulf %9, %10 : vector<8x8xf32>
    %cst_9 = arith.constant dense<0xFF800000> : vector<8xf32>
    %12 = vector.multi_reduction <maximumf>, %11, %cst_9 [1] : vector<8x8xf32> to vector<8xf32>
    %13 = vector.shape_cast %12 : vector<8xf32> to vector<8x1xf32>
    %14 = vector.broadcast %13 : vector<8x1xf32> to vector<8x8xf32>
    %15 = arith.subf %11, %14 : vector<8x8xf32>
    %16 = math.exp %15 : vector<8x8xf32>
    %cst_10 = arith.constant dense<0.000000e+00> : vector<8xf32>
    %17 = vector.multi_reduction <add>, %16, %cst_10 [1] : vector<8x8xf32> to vector<8xf32>
    %18 = vector.shape_cast %17 : vector<8xf32> to vector<8x1xf32>
    %19 = vector.broadcast %18 : vector<8x1xf32> to vector<8x8xf32>
    %20 = arith.divf %16, %19 : vector<8x8xf32>
    %21 = arith.truncf %20 : vector<8x8xf32> to vector<8x8xbf16>
    %cst_11 = arith.constant dense<0.000000e+00> : vector<8x32xf32>
    %22 = tpu.matmul %21, %8, %cst_11 {dimension_numbers = #tpu.dot_dimension_numbers<[1], [0], [0], [1], [0, 0, 1, 1], [], []>} : vector<8x8xbf16>, vector<8x32xbf16>, vector<8x32xf32> -> vector<8x32xf32>
    %c0_12 = arith.constant 0 : index
    %c0_13 = arith.constant 0 : index
    %c0_14 = arith.constant 0 : index
    %23 = vector.load %arg4[%c0_12, %c0_13, %c0_14] : memref<1x8x32xf32, #tpu.memory_space<vmem>>, vector<1x8x32xf32>
    %24 = vector.shape_cast %23 : vector<1x8x32xf32> to vector<8x32xf32>
    %25 = vector.shape_cast %22 : vector<8x32xf32> to vector<1x8x32xf32>
    tpu.vector_store %arg4[%c0_12, %c0_13, %c0_14], %25 {strides = array<i32>} : memref<1x8x32xf32, #tpu.memory_space<vmem>>, vector<1x8x32xf32>,
    return
  }
  func.func @transform_0(%arg0: i32) -> (i32, i32, i32) {
    %c0_i32 = arith.constant 0 : i32
    %c0_i32_0 = arith.constant 0 : i32
    %c0_i32_1 = arith.constant 0 : i32
    return %arg0, %c0_i32, %c0_i32_0 : i32, i32, i32
  }
  func.func @transform_1(%arg0: i32) -> (i32, i32, i32) {
    %c0_i32 = arith.constant 0 : i32
    %c0_i32_0 = arith.constant 0 : i32
    %c0_i32_1 = arith.constant 0 : i32
    return %arg0, %c0_i32, %c0_i32_0 : i32, i32, i32
  }
  func.func @transform_2(%arg0: i32) -> (i32, i32, i32) {
    %c0_i32 = arith.constant 0 : i32
    %c0_i32_0 = arith.constant 0 : i32
    %c0_i32_1 = arith.constant 0 : i32
    return %arg0, %c0_i32, %c0_i32_0 : i32, i32, i32
  }
  func.func @transform_3(%arg0: i32) -> (i32, i32, i32) {
    %c0_i32 = arith.constant 0 : i32
    %c0_i32_0 = arith.constant 0 : i32
    %c0_i32_1 = arith.constant 0 : i32
    return %arg0, %c0_i32, %c0_i32_0 : i32, i32, i32
  }
}

module attributes {stable_mosaic.version = 11 : i64} {
  func.func @_matmul_bias_kernel(%arg0: i32, %arg1: memref<16x128xf32, #tpu.memory_space<vmem>>, %arg2: memref<128x128xbf16, #tpu.memory_space<vmem>>, %arg3: memref<1x128xf32, #tpu.memory_space<vmem>>, %arg4: memref<16x128xf32, #tpu.memory_space<vmem>>) attributes {dimension_semantics = [#tpu.dimension_semantics<parallel>], iteration_bounds = array<i64: 1>, scalar_prefetch = 0 : i64, scratch_operands = 0 : i64, tpu.core_type = #tpu.core_type<tc>, window_params = [{transform_indices = @transform_0, window_bounds = array<i64: 16, 128>}, {pipeline_mode = #tpu.pipeline_mode<synchronous>, transform_indices = @transform_1, window_bounds = array<i64: 128, 128>}, {pipeline_mode = #tpu.pipeline_mode<synchronous>, transform_indices = @transform_2, window_bounds = array<i64: 1, 128>}, {transform_indices = @transform_3, window_bounds = array<i64: 16, 128>}]} {
    %c0 = arith.constant 0 : index
    %c0_0 = arith.constant 0 : index
    %0 = vector.load %arg1[%c0, %c0_0] : memref<16x128xf32, #tpu.memory_space<vmem>>, vector<16x128xf32>
    %1 = arith.truncf %0 : vector<16x128xf32> to vector<16x128xbf16>
    %c0_1 = arith.constant 0 : index
    %c0_2 = arith.constant 0 : index
    %2 = vector.load %arg2[%c0_1, %c0_2] : memref<128x128xbf16, #tpu.memory_space<vmem>>, vector<128x128xbf16>
    %cst = arith.constant dense<0.000000e+00> : vector<16x128xf32>
    %3 = tpu.matmul %1, %2, %cst {dimension_numbers = #tpu.dot_dimension_numbers<[1], [0], [0], [1], [0, 0, 1, 1], [], []>} : vector<16x128xbf16>, vector<128x128xbf16>, vector<16x128xf32> -> vector<16x128xf32>
    %c0_3 = arith.constant 0 : index
    %c0_4 = arith.constant 0 : index
    %4 = vector.load %arg3[%c0_3, %c0_4] : memref<1x128xf32, #tpu.memory_space<vmem>>, vector<1x128xf32>
    %5 = vector.broadcast %4 : vector<1x128xf32> to vector<16x128xf32>
    %6 = arith.addf %3, %5 : vector<16x128xf32>
    %c0_5 = arith.constant 0 : index
    %c0_6 = arith.constant 0 : index
    %7 = vector.load %arg4[%c0_5, %c0_6] : memref<16x128xf32, #tpu.memory_space<vmem>>, vector<16x128xf32>
    tpu.vector_store %arg4[%c0_5, %c0_6], %6 {strides = array<i32>} : memref<16x128xf32, #tpu.memory_space<vmem>>, vector<16x128xf32>,
    return
  }
  func.func @transform_0(%arg0: i32) -> (i32, i32) {
    %c0_i32 = arith.constant 0 : i32
    %c0_i32_0 = arith.constant 0 : i32
    return %arg0, %c0_i32 : i32, i32
  }
  func.func @transform_1(%arg0: i32) -> (i32, i32) {
    %c0_i32 = arith.constant 0 : i32
    %c0_i32_0 = arith.constant 0 : i32
    %c0_i32_1 = arith.constant 0 : i32
    return %c0_i32, %c0_i32_0 : i32, i32
  }
  func.func @transform_2(%arg0: i32) -> (i32, i32) {
    %c0_i32 = arith.constant 0 : i32
    %c0_i32_0 = arith.constant 0 : i32
    %c0_i32_1 = arith.constant 0 : i32
    return %c0_i32, %c0_i32_0 : i32, i32
  }
  func.func @transform_3(%arg0: i32) -> (i32, i32) {
    %c0_i32 = arith.constant 0 : i32
    %c0_i32_0 = arith.constant 0 : i32
    return %arg0, %c0_i32 : i32, i32
  }
}

module attributes {stable_mosaic.version = 11 : i64} {
  func.func @_matmul_bias_kernel(%arg0: i32, %arg1: memref<32x128xf32, #tpu.memory_space<vmem>>, %arg2: memref<128x256xbf16, #tpu.memory_space<vmem>>, %arg3: memref<1x256xf32, #tpu.memory_space<vmem>>, %arg4: memref<32x256xf32, #tpu.memory_space<vmem>>) attributes {dimension_semantics = [#tpu.dimension_semantics<parallel>], iteration_bounds = array<i64: 1>, scalar_prefetch = 0 : i64, scratch_operands = 0 : i64, tpu.core_type = #tpu.core_type<tc>, window_params = [{transform_indices = @transform_0, window_bounds = array<i64: 32, 128>}, {pipeline_mode = #tpu.pipeline_mode<synchronous>, transform_indices = @transform_1, window_bounds = array<i64: 128, 256>}, {pipeline_mode = #tpu.pipeline_mode<synchronous>, transform_indices = @transform_2, window_bounds = array<i64: 1, 256>}, {transform_indices = @transform_3, window_bounds = array<i64: 32, 256>}]} {
    %c0 = arith.constant 0 : index
    %c0_0 = arith.constant 0 : index
    %0 = vector.load %arg1[%c0, %c0_0] : memref<32x128xf32, #tpu.memory_space<vmem>>, vector<32x128xf32>
    %1 = arith.truncf %0 : vector<32x128xf32> to vector<32x128xbf16>
    %c0_1 = arith.constant 0 : index
    %c0_2 = arith.constant 0 : index
    %2 = vector.load %arg2[%c0_1, %c0_2] : memref<128x256xbf16, #tpu.memory_space<vmem>>, vector<128x256xbf16>
    %cst = arith.constant dense<0.000000e+00> : vector<32x256xf32>
    %3 = tpu.matmul %1, %2, %cst {dimension_numbers = #tpu.dot_dimension_numbers<[1], [0], [0], [1], [0, 0, 1, 1], [], []>} : vector<32x128xbf16>, vector<128x256xbf16>, vector<32x256xf32> -> vector<32x256xf32>
    %c0_3 = arith.constant 0 : index
    %c0_4 = arith.constant 0 : index
    %4 = vector.load %arg3[%c0_3, %c0_4] : memref<1x256xf32, #tpu.memory_space<vmem>>, vector<1x256xf32>
    %5 = vector.broadcast %4 : vector<1x256xf32> to vector<32x256xf32>
    %6 = arith.addf %3, %5 : vector<32x256xf32>
    %c0_5 = arith.constant 0 : index
    %c0_6 = arith.constant 0 : index
    %7 = vector.load %arg4[%c0_5, %c0_6] : memref<32x256xf32, #tpu.memory_space<vmem>>, vector<32x256xf32>
    tpu.vector_store %arg4[%c0_5, %c0_6], %6 {strides = array<i32>} : memref<32x256xf32, #tpu.memory_space<vmem>>, vector<32x256xf32>,
    return
  }
  func.func @transform_0(%arg0: i32) -> (i32, i32) {
    %c0_i32 = arith.constant 0 : i32
    %c0_i32_0 = arith.constant 0 : i32
    return %arg0, %c0_i32 : i32, i32
  }
  func.func @transform_1(%arg0: i32) -> (i32, i32) {
    %c0_i32 = arith.constant 0 : i32
    %c0_i32_0 = arith.constant 0 : i32
    %c0_i32_1 = arith.constant 0 : i32
    return %c0_i32, %c0_i32_0 : i32, i32
  }
  func.func @transform_2(%arg0: i32) -> (i32, i32) {
    %c0_i32 = arith.constant 0 : i32
    %c0_i32_0 = arith.constant 0 : i32
    %c0_i32_1 = arith.constant 0 : i32
    return %c0_i32, %c0_i32_0 : i32, i32
  }
  func.func @transform_3(%arg0: i32) -> (i32, i32) {
    %c0_i32 = arith.constant 0 : i32
    %c0_i32_0 = arith.constant 0 : i32
    return %arg0, %c0_i32 : i32, i32
  }
}

module attributes {stable_mosaic.version = 11 : i64} {
  func.func @_mha_kernel(%arg0: i32, %arg1: memref<1x8x32xf32, #tpu.memory_space<vmem>>, %arg2: memref<1x16x32xf32, #tpu.memory_space<vmem>>, %arg3: memref<1x16x32xf32, #tpu.memory_space<vmem>>, %arg4: memref<1x8x32xf32, #tpu.memory_space<vmem>>) attributes {dimension_semantics = [#tpu.dimension_semantics<parallel>], iteration_bounds = array<i64: 8>, scalar_prefetch = 0 : i64, scratch_operands = 0 : i64, tpu.core_type = #tpu.core_type<tc>, window_params = [{transform_indices = @transform_0, window_bounds = array<i64: 1, 8, 32>}, {transform_indices = @transform_1, window_bounds = array<i64: 1, 16, 32>}, {transform_indices = @transform_2, window_bounds = array<i64: 1, 16, 32>}, {transform_indices = @transform_3, window_bounds = array<i64: 1, 8, 32>}]} {
    %c0 = arith.constant 0 : index
    %c0_0 = arith.constant 0 : index
    %c0_1 = arith.constant 0 : index
    %0 = vector.load %arg1[%c0, %c0_0, %c0_1] : memref<1x8x32xf32, #tpu.memory_space<vmem>>, vector<1x8x32xf32>
    %1 = vector.shape_cast %0 : vector<1x8x32xf32> to vector<8x32xf32>
    %2 = arith.truncf %1 : vector<8x32xf32> to vector<8x32xbf16>
    %c0_2 = arith.constant 0 : index
    %c0_3 = arith.constant 0 : index
    %c0_4 = arith.constant 0 : index
    %3 = vector.load %arg2[%c0_2, %c0_3, %c0_4] : memref<1x16x32xf32, #tpu.memory_space<vmem>>, vector<1x16x32xf32>
    %4 = vector.shape_cast %3 : vector<1x16x32xf32> to vector<16x32xf32>
    %5 = arith.truncf %4 : vector<16x32xf32> to vector<16x32xbf16>
    %c0_5 = arith.constant 0 : index
    %c0_6 = arith.constant 0 : index
    %c0_7 = arith.constant 0 : index
    %6 = vector.load %arg3[%c0_5, %c0_6, %c0_7] : memref<1x16x32xf32, #tpu.memory_space<vmem>>, vector<1x16x32xf32>
    %7 = vector.shape_cast %6 : vector<1x16x32xf32> to vector<16x32xf32>
    %8 = arith.truncf %7 : vector<16x32xf32> to vector<16x32xbf16>
    %cst = arith.constant dense<0.000000e+00> : vector<8x16xf32>
    %9 = tpu.matmul %2, %5, %cst {dimension_numbers = #tpu.dot_dimension_numbers<[1], [1], [0], [0], [0, 0, 1, 0], [], []>} : vector<8x32xbf16>, vector<16x32xbf16>, vector<8x16xf32> -> vector<8x16xf32>
    %cst_8 = arith.constant 0.176776692 : f32
    %10 = vector.broadcast %cst_8 : f32 to vector<8x16xf32>
    %11 = arith.mulf %9, %10 : vector<8x16xf32>
    %cst_9 = arith.constant dense<0xFF800000> : vector<8xf32>
    %12 = vector.multi_reduction <maximumf>, %11, %cst_9 [1] : vector<8x16xf32> to vector<8xf32>
    %13 = vector.shape_cast %12 : vector<8xf32> to vector<8x1xf32>
    %14 = vector.broadcast %13 : vector<8x1xf32> to vector<8x16xf32>
    %15 = arith.subf %11, %14 : vector<8x16xf32>
    %16 = math.exp %15 : vector<8x16xf32>
    %cst_10 = arith.constant dense<0.000000e+00> : vector<8xf32>
    %17 = vector.multi_reduction <add>, %16, %cst_10 [1] : vector<8x16xf32> to vector<8xf32>
    %18 = vector.shape_cast %17 : vector<8xf32> to vector<8x1xf32>
    %19 = vector.broadcast %18 : vector<8x1xf32> to vector<8x16xf32>
    %20 = arith.divf %16, %19 : vector<8x16xf32>
    %21 = arith.truncf %20 : vector<8x16xf32> to vector<8x16xbf16>
    %cst_11 = arith.constant dense<0.000000e+00> : vector<8x32xf32>
    %22 = tpu.matmul %21, %8, %cst_11 {dimension_numbers = #tpu.dot_dimension_numbers<[1], [0], [0], [1], [0, 0, 1, 1], [], []>} : vector<8x16xbf16>, vector<16x32xbf16>, vector<8x32xf32> -> vector<8x32xf32>
    %c0_12 = arith.constant 0 : index
    %c0_13 = arith.constant 0 : index
    %c0_14 = arith.constant 0 : index
    %23 = vector.load %arg4[%c0_12, %c0_13, %c0_14] : memref<1x8x32xf32, #tpu.memory_space<vmem>>, vector<1x8x32xf32>
    %24 = vector.shape_cast %23 : vector<1x8x32xf32> to vector<8x32xf32>
    %25 = vector.shape_cast %22 : vector<8x32xf32> to vector<1x8x32xf32>
    tpu.vector_store %arg4[%c0_12, %c0_13, %c0_14], %25 {strides = array<i32>} : memref<1x8x32xf32, #tpu.memory_space<vmem>>, vector<1x8x32xf32>,
    return
  }
  func.func @transform_0(%arg0: i32) -> (i32, i32, i32) {
    %c0_i32 = arith.constant 0 : i32
    %c0_i32_0 = arith.constant 0 : i32
    %c0_i32_1 = arith.constant 0 : i32
    return %arg0, %c0_i32, %c0_i32_0 : i32, i32, i32
  }
  func.func @transform_1(%arg0: i32) -> (i32, i32, i32) {
    %c0_i32 = arith.constant 0 : i32
    %c0_i32_0 = arith.constant 0 : i32
    %c0_i32_1 = arith.constant 0 : i32
    return %arg0, %c0_i32, %c0_i32_0 : i32, i32, i32
  }
  func.func @transform_2(%arg0: i32) -> (i32, i32, i32) {
    %c0_i32 = arith.constant 0 : i32
    %c0_i32_0 = arith.constant 0 : i32
    %c0_i32_1 = arith.constant 0 : i32
    return %arg0, %c0_i32, %c0_i32_0 : i32, i32, i32
  }
  func.func @transform_3(%arg0: i32) -> (i32, i32, i32) {
    %c0_i32 = arith.constant 0 : i32
    %c0_i32_0 = arith.constant 0 : i32
    %c0_i32_1 = arith.constant 0 : i32
    return %arg0, %c0_i32, %c0_i32_0 : i32, i32, i32
  }
}

module attributes {stable_mosaic.version = 11 : i64} {
  func.func @_matmul_bias_kernel(%arg0: i32, %arg1: memref<16x128xf32, #tpu.memory_space<vmem>>, %arg2: memref<128x384xbf16, #tpu.memory_space<vmem>>, %arg3: memref<1x384xf32, #tpu.memory_space<vmem>>, %arg4: memref<16x384xf32, #tpu.memory_space<vmem>>) attributes {dimension_semantics = [#tpu.dimension_semantics<parallel>], iteration_bounds = array<i64: 1>, scalar_prefetch = 0 : i64, scratch_operands = 0 : i64, tpu.core_type = #tpu.core_type<tc>, window_params = [{transform_indices = @transform_0, window_bounds = array<i64: 16, 128>}, {pipeline_mode = #tpu.pipeline_mode<synchronous>, transform_indices = @transform_1, window_bounds = array<i64: 128, 384>}, {pipeline_mode = #tpu.pipeline_mode<synchronous>, transform_indices = @transform_2, window_bounds = array<i64: 1, 384>}, {transform_indices = @transform_3, window_bounds = array<i64: 16, 384>}]} {
    %c0 = arith.constant 0 : index
    %c0_0 = arith.constant 0 : index
    %0 = vector.load %arg1[%c0, %c0_0] : memref<16x128xf32, #tpu.memory_space<vmem>>, vector<16x128xf32>
    %1 = arith.truncf %0 : vector<16x128xf32> to vector<16x128xbf16>
    %c0_1 = arith.constant 0 : index
    %c0_2 = arith.constant 0 : index
    %2 = vector.load %arg2[%c0_1, %c0_2] : memref<128x384xbf16, #tpu.memory_space<vmem>>, vector<128x384xbf16>
    %cst = arith.constant dense<0.000000e+00> : vector<16x384xf32>
    %3 = tpu.matmul %1, %2, %cst {dimension_numbers = #tpu.dot_dimension_numbers<[1], [0], [0], [1], [0, 0, 1, 1], [], []>} : vector<16x128xbf16>, vector<128x384xbf16>, vector<16x384xf32> -> vector<16x384xf32>
    %c0_3 = arith.constant 0 : index
    %c0_4 = arith.constant 0 : index
    %4 = vector.load %arg3[%c0_3, %c0_4] : memref<1x384xf32, #tpu.memory_space<vmem>>, vector<1x384xf32>
    %5 = vector.broadcast %4 : vector<1x384xf32> to vector<16x384xf32>
    %6 = arith.addf %3, %5 : vector<16x384xf32>
    %c0_5 = arith.constant 0 : index
    %c0_6 = arith.constant 0 : index
    %7 = vector.load %arg4[%c0_5, %c0_6] : memref<16x384xf32, #tpu.memory_space<vmem>>, vector<16x384xf32>
    tpu.vector_store %arg4[%c0_5, %c0_6], %6 {strides = array<i32>} : memref<16x384xf32, #tpu.memory_space<vmem>>, vector<16x384xf32>,
    return
  }
  func.func @transform_0(%arg0: i32) -> (i32, i32) {
    %c0_i32 = arith.constant 0 : i32
    %c0_i32_0 = arith.constant 0 : i32
    return %arg0, %c0_i32 : i32, i32
  }
  func.func @transform_1(%arg0: i32) -> (i32, i32) {
    %c0_i32 = arith.constant 0 : i32
    %c0_i32_0 = arith.constant 0 : i32
    %c0_i32_1 = arith.constant 0 : i32
    return %c0_i32, %c0_i32_0 : i32, i32
  }
  func.func @transform_2(%arg0: i32) -> (i32, i32) {
    %c0_i32 = arith.constant 0 : i32
    %c0_i32_0 = arith.constant 0 : i32
    %c0_i32_1 = arith.constant 0 : i32
    return %c0_i32, %c0_i32_0 : i32, i32
  }
  func.func @transform_3(%arg0: i32) -> (i32, i32) {
    %c0_i32 = arith.constant 0 : i32
    %c0_i32_0 = arith.constant 0 : i32
    return %arg0, %c0_i32 : i32, i32
  }
}

module attributes {stable_mosaic.version = 11 : i64} {
  func.func @_ffn_add_ln_kernel(%arg0: i32, %arg1: memref<16x128xf32, #tpu.memory_space<vmem>>, %arg2: memref<128x256xbf16, #tpu.memory_space<vmem>>, %arg3: memref<1x256xf32, #tpu.memory_space<vmem>>, %arg4: memref<256x128xbf16, #tpu.memory_space<vmem>>, %arg5: memref<1x128xf32, #tpu.memory_space<vmem>>, %arg6: memref<1x128xf32, #tpu.memory_space<vmem>>, %arg7: memref<1x128xf32, #tpu.memory_space<vmem>>, %arg8: memref<16x128xf32, #tpu.memory_space<vmem>>) attributes {dimension_semantics = [#tpu.dimension_semantics<parallel>], iteration_bounds = array<i64: 1>, scalar_prefetch = 0 : i64, scratch_operands = 0 : i64, tpu.core_type = #tpu.core_type<tc>, window_params = [{transform_indices = @transform_0, window_bounds = array<i64: 16, 128>}, {pipeline_mode = #tpu.pipeline_mode<synchronous>, transform_indices = @transform_1, window_bounds = array<i64: 128, 256>}, {pipeline_mode = #tpu.pipeline_mode<synchronous>, transform_indices = @transform_2, window_bounds = array<i64: 1, 256>}, {pipeline_mode = #tpu.pipeline_mode<synchronous>, transform_indices = @transform_3, window_bounds = array<i64: 256, 128>}, {pipeline_mode = #tpu.pipeline_mode<synchronous>, transform_indices = @transform_4, window_bounds = array<i64: 1, 128>}, {pipeline_mode = #tpu.pipeline_mode<synchronous>, transform_indices = @transform_5, window_bounds = array<i64: 1, 128>}, {pipeline_mode = #tpu.pipeline_mode<synchronous>, transform_indices = @transform_6, window_bounds = array<i64: 1, 128>}, {transform_indices = @transform_7, window_bounds = array<i64: 16, 128>}]} {
    %c0 = arith.constant 0 : index
    %c0_0 = arith.constant 0 : index
    %0 = vector.load %arg1[%c0, %c0_0] : memref<16x128xf32, #tpu.memory_space<vmem>>, vector<16x128xf32>
    %1 = arith.truncf %0 : vector<16x128xf32> to vector<16x128xbf16>
    %c0_1 = arith.constant 0 : index
    %c0_2 = arith.constant 0 : index
    %2 = vector.load %arg2[%c0_1, %c0_2] : memref<128x256xbf16, #tpu.memory_space<vmem>>, vector<128x256xbf16>
    %cst = arith.constant dense<0.000000e+00> : vector<16x256xf32>
    %3 = tpu.matmul %1, %2, %cst {dimension_numbers = #tpu.dot_dimension_numbers<[1], [0], [0], [1], [0, 0, 1, 1], [], []>} : vector<16x128xbf16>, vector<128x256xbf16>, vector<16x256xf32> -> vector<16x256xf32>
    %c0_3 = arith.constant 0 : index
    %c0_4 = arith.constant 0 : index
    %4 = vector.load %arg3[%c0_3, %c0_4] : memref<1x256xf32, #tpu.memory_space<vmem>>, vector<1x256xf32>
    %5 = vector.broadcast %4 : vector<1x256xf32> to vector<16x256xf32>
    %6 = arith.addf %3, %5 : vector<16x256xf32>
    %cst_5 = arith.constant 0.000000e+00 : f32
    %7 = vector.broadcast %cst_5 : f32 to vector<16x256xf32>
    %8 = arith.maximumf %6, %7 : vector<16x256xf32>
    %9 = arith.truncf %8 : vector<16x256xf32> to vector<16x256xbf16>
    %c0_6 = arith.constant 0 : index
    %c0_7 = arith.constant 0 : index
    %10 = vector.load %arg4[%c0_6, %c0_7] : memref<256x128xbf16, #tpu.memory_space<vmem>>, vector<256x128xbf16>
    %cst_8 = arith.constant dense<0.000000e+00> : vector<16x128xf32>
    %11 = tpu.matmul %9, %10, %cst_8 {dimension_numbers = #tpu.dot_dimension_numbers<[1], [0], [0], [1], [0, 0, 1, 1], [], []>} : vector<16x256xbf16>, vector<256x128xbf16>, vector<16x128xf32> -> vector<16x128xf32>
    %c0_9 = arith.constant 0 : index
    %c0_10 = arith.constant 0 : index
    %12 = vector.load %arg5[%c0_9, %c0_10] : memref<1x128xf32, #tpu.memory_space<vmem>>, vector<1x128xf32>
    %13 = vector.broadcast %12 : vector<1x128xf32> to vector<16x128xf32>
    %14 = arith.addf %11, %13 : vector<16x128xf32>
    %15 = arith.addf %14, %0 : vector<16x128xf32>
    %cst_11 = arith.constant dense<0.000000e+00> : vector<16xf32>
    %16 = vector.multi_reduction <add>, %15, %cst_11 [1] : vector<16x128xf32> to vector<16xf32>
    %17 = vector.shape_cast %16 : vector<16xf32> to vector<16x1xf32>
    %cst_12 = arith.constant 1.280000e+02 : f32
    %18 = vector.broadcast %cst_12 : f32 to vector<16x1xf32>
    %19 = arith.divf %17, %18 : vector<16x1xf32>
    %20 = vector.broadcast %19 : vector<16x1xf32> to vector<16x128xf32>
    %21 = arith.subf %15, %20 : vector<16x128xf32>
    %22 = arith.mulf %21, %21 : vector<16x128xf32>
    %cst_13 = arith.constant dense<0.000000e+00> : vector<16xf32>
    %23 = vector.multi_reduction <add>, %22, %cst_13 [1] : vector<16x128xf32> to vector<16xf32>
    %24 = vector.shape_cast %23 : vector<16xf32> to vector<16x1xf32>
    %cst_14 = arith.constant 1.280000e+02 : f32
    %25 = vector.broadcast %cst_14 : f32 to vector<16x1xf32>
    %26 = arith.divf %24, %25 : vector<16x1xf32>
    %cst_15 = arith.constant 9.99999974E-6 : f32
    %27 = vector.broadcast %cst_15 : f32 to vector<16x1xf32>
    %28 = arith.addf %26, %27 : vector<16x1xf32>
    %29 = math.rsqrt %28 : vector<16x1xf32>
    %30 = vector.broadcast %29 : vector<16x1xf32> to vector<16x128xf32>
    %31 = arith.mulf %21, %30 : vector<16x128xf32>
    %c0_16 = arith.constant 0 : index
    %c0_17 = arith.constant 0 : index
    %32 = vector.load %arg6[%c0_16, %c0_17] : memref<1x128xf32, #tpu.memory_space<vmem>>, vector<1x128xf32>
    %33 = vector.broadcast %32 : vector<1x128xf32> to vector<16x128xf32>
    %34 = arith.mulf %31, %33 : vector<16x128xf32>
    %c0_18 = arith.constant 0 : index
    %c0_19 = arith.constant 0 : index
    %35 = vector.load %arg7[%c0_18, %c0_19] : memref<1x128xf32, #tpu.memory_space<vmem>>, vector<1x128xf32>
    %36 = vector.broadcast %35 : vector<1x128xf32> to vector<16x128xf32>
    %37 = arith.addf %34, %36 : vector<16x128xf32>
    %c0_20 = arith.constant 0 : index
    %c0_21 = arith.constant 0 : index
    %38 = vector.load %arg8[%c0_20, %c0_21] : memref<16x128xf32, #tpu.memory_space<vmem>>, vector<16x128xf32>
    tpu.vector_store %arg8[%c0_20, %c0_21], %37 {strides = array<i32>} : memref<16x128xf32, #tpu.memory_space<vmem>>, vector<16x128xf32>,
    return
  }
  func.func @transform_0(%arg0: i32) -> (i32, i32) {
    %c0_i32 = arith.constant 0 : i32
    %c0_i32_0 = arith.constant 0 : i32
    return %arg0, %c0_i32 : i32, i32
  }
  func.func @transform_1(%arg0: i32) -> (i32, i32) {
    %c0_i32 = arith.constant 0 : i32
    %c0_i32_0 = arith.constant 0 : i32
    %c0_i32_1 = arith.constant 0 : i32
    return %c0_i32, %c0_i32_0 : i32, i32
  }
  func.func @transform_2(%arg0: i32) -> (i32, i32) {
    %c0_i32 = arith.constant 0 : i32
    %c0_i32_0 = arith.constant 0 : i32
    %c0_i32_1 = arith.constant 0 : i32
    return %c0_i32, %c0_i32_0 : i32, i32
  }
  func.func @transform_3(%arg0: i32) -> (i32, i32) {
    %c0_i32 = arith.constant 0 : i32
    %c0_i32_0 = arith.constant 0 : i32
    %c0_i32_1 = arith.constant 0 : i32
    return %c0_i32, %c0_i32_0 : i32, i32
  }
  func.func @transform_4(%arg0: i32) -> (i32, i32) {
    %c0_i32 = arith.constant 0 : i32
    %c0_i32_0 = arith.constant 0 : i32
    %c0_i32_1 = arith.constant 0 : i32
    return %c0_i32, %c0_i32_0 : i32, i32
  }
  func.func @transform_5(%arg0: i32) -> (i32, i32) {
    %c0_i32 = arith.constant 0 : i32
    %c0_i32_0 = arith.constant 0 : i32
    %c0_i32_1 = arith.constant 0 : i32
    return %c0_i32, %c0_i32_0 : i32, i32
  }
  func.func @transform_6(%arg0: i32) -> (i32, i32) {
    %c0_i32 = arith.constant 0 : i32
    %c0_i32_0 = arith.constant 0 : i32
    %c0_i32_1 = arith.constant 0 : i32
    return %c0_i32, %c0_i32_0 : i32, i32
  }
  func.func @transform_7(%arg0: i32) -> (i32, i32) {
    %c0_i32 = arith.constant 0 : i32
    %c0_i32_0 = arith.constant 0 : i32
    return %arg0, %c0_i32 : i32, i32
  }
}

</mosaic_0001>

<bundles_post_ra>
// kernel: transformer_decoder_forward.19
= control target key start
LH: loop header
LB: loop body
LE: loop exit
PB: predicated region body
PF: predicated region fallthrough
CT: control target
= control target key end

     0   :  { %v184_v0 = vmov 0.0   ;;  %vm185_vm0 = vmmov 0   ;;  %s245_s1 = inlined_call_operand.vmem [shape: bf16[128,128], index: 1, kind: input, shape index: {}]   ;;  %s246_s0 = inlined_call_operand.vmem [shape: f32[16,128], index: 0, kind: input, shape index: {}]   ;;  %s247_s2 = inlined_call_operand.vmem [shape: f32[1,128], index: 2, kind: input, shape index: {}]   ;;  %s248_s3 = inlined_call_operand.vmem [shape: f32[16,128], index: 3, kind: output, shape index: {}]  }
   0x1   :  { %154 = vmatprep.subr.bf16.mxu0 %v184_v0  ;;  %v176_v1 = vld [vmem:[%s245_s1 + $0x38] sm:$0xff]   ;;  %170 = vmatprep.mubr.msk.bf16.mxu0 %vm185_vm0, %v184_v0  ;;  %v177_v2 = vld [vmem:[%s245_s1 + $0x30] sm:$0xff]   ;;  %v178_v3 = vld [vmem:[%s245_s1 + $0x28] sm:$0xff]  }
   0x2   :  { %155 = vmatpush3.bf16.msra.mxu0 %v176_v1  ;;  %v179_v4 = vld [vmem:[%s245_s1 + $0x20] sm:$0xff]   ;;  %v180_v5 = vld [vmem:[%s245_s1 + $0x18] sm:$0xff]   ;;  %v181_v6 = vld [vmem:[%s245_s1 + $0x10] sm:$0xff]  }
   0x3   :  { %156 = vmatprep.subr.bf16.mxu0 %v184_v0  ;;  %v182_v7 = vld [vmem:[%s245_s1 + $0x8] sm:$0xff]   ;;  %v183_v8 = vld [vmem:[%s245_s1] sm:$0xff]  }
   0x4   :  { %v15_v9 = vld [vmem:[%s246_s0] sm:$0xff]  ;;  %v16_v10 = vld [vmem:[%s246_s0 + $0x8] sm:$0xff] }
   0x5   :  { %v17_v11 = vpack.c.bf16 %v16_v10, %v15_v9  ;;  %v136_v12 = vld [vmem:[%s247_s2] ss:$0 sm:$0xff] }
   0x6   :  { %157 = vmatpush3.bf16.msra.mxu0 %v177_v2 }
   0x7   :  { %158 = vmatprep.subr.bf16.mxu0 %v184_v0 }
   0xa   :  { %159 = vmatpush3.bf16.msra.mxu0 %v178_v3 }
   0xb   :  { %160 = vmatprep.subr.bf16.mxu0 %v184_v0 }
   0xe   :  { %161 = vmatpush3.bf16.msra.mxu0 %v179_v4 }
   0xf   :  { %162 = vmatprep.subr.bf16.mxu0 %v184_v0 }
  0x12   :  { %163 = vmatpush3.bf16.msra.mxu0 %v180_v5 }
  0x13   :  { %164 = vmatprep.subr.bf16.mxu0 %v184_v0 }
  0x16   :  { %165 = vmatpush3.bf16.msra.mxu0 %v181_v6 }
  0x17   :  { %166 = vmatprep.subr.bf16.mxu0 %v184_v0 }
  0x1a   :  { %167 = vmatpush3.bf16.msra.mxu0 %v182_v7 }
  0x1b   :  { %168 = vmatprep.subr.bf16.mxu0 %v184_v0 }
  0x1e   :  { %169 = vmatpush3.bf16.msra.mxu0 %v183_v8 }
  0x21   :  { %171 = vmatmul.mubr.bf16.vlgmr.msra.gmra.mxu0 %v17_v11 }
  0xe1   :  { %v123_v13 = vpop.f32.mrf.mxu0 }
  0xe2   :  { %v124_v14 = vadd.f32 %v136_v12, %v123_v13 }
  0xe3   :  { %v172_v15 = vpop.f32.mrf.mxu0 }
  0xe4   :  { %130 = vst [vmem:[%s248_s3] sm:$0xff] %v124_v14 }
  0xe5   :  { %v126_v16 = vpop.f32.mrf.mxu0 }
  0xe6   :  { %v127_v17 = vadd.f32 %v136_v12, %v126_v16 }
  0xe7   :  { %v173_v18 = vpop.f32.mrf.mxu0 }
  0xe8   :  { %131 = vst [vmem:[%s248_s3 + $0x8] sm:$0xff] %v127_v17 }

// kernel: transformer_decoder_forward.17
= control target key start
LH: loop header
LB: loop body
LE: loop exit
PB: predicated region body
PF: predicated region fallthrough
CT: control target
= control target key end

     0   :  { %s466_s12 = smov 0   ;;  %s501_s0 = inlined_call_operand.vmem [shape: f32[8,8,32], index: 0, kind: input, shape index: {}]   ;;  %s502_s1 = inlined_call_operand.vmem [shape: f32[8,8,32], index: 1, kind: input, shape index: {}]   ;;  %s503_s2 = inlined_call_operand.vmem [shape: f32[8,8,32], index: 2, kind: input, shape index: {}]   ;;  %s504_s3 = inlined_call_operand.vmem [shape: f32[8,8,32], index: 3, kind: output, shape index: {}]  }
   0x1 LB: > { %s393_s13 = sadd.s32 4294967295, %s442_s12   ;;  %p397_p0 = scmp.ge.s32.totalorder %s442_s12, 1  ;;  %s442_s12 = sphi %s466_s12, %s13_s12  }
   0x2   : > { %p154_p1 = scmp.lt.s32.totalorder %s442_s12, 9 }
   0x4   : > { %p155_p2 = pnand %p397_p0, %p154_p1 }
   0x5   : > { %p184_p3 = scmp.lt.s32.totalorder (!%p155_p2), %s393_s13, 7 }
   0x6   : > { %158 = sbr.rel (%p155_p2) target bundleno = 733 (0x2dd), region = 32 }
   0xb   : > { %v444_v0 = vmov 0.0   ;;  %vm445_vm0 = vmmov 0   ;;  %s506_s13 = smov (!%p184_p3, %s393_s13), 7  ;;  %vm207_vm1 = vcmask 261120   ;;  %vm255_vm2 = vcmask 64512  }
   0xc   : > { %410 = vmatprep.subr.bf16.mxu0 %v444_v0  ;;  %412 = vmatprep.mubr.msk.bf16.mxu0 %vm445_vm0, %v444_v0  ;;  %s474_s14 = sshll.u32 %s506_s13, 3  ;;  %vm271_vm3 = vcmask 1043456  }
   0xd   : > { %416 = vmatprep.subr.bf16.mxu1 %v444_v0  ;;  %418 = vmatprep.mubr.msk.bf16.mxu1 %vm445_vm0, %v444_v0  ;;  %s191_s17 = scalar_lea.vmem %s502_s1, %s474_s14  ;;  %s187_s20 = scalar_lea.vmem %s501_s0, %s474_s14 }
   0xe   : > { %v203_v1 = vld [vmem:[%s191_s17] sm:$0xff]  ;;  %s195_s23 = scalar_lea.vmem %s503_s2, %s474_s14  ;;  %s199_s26 = scalar_lea.vmem %s504_s3, %s474_s14 }
   0xf   : > { %v204_v2 = vpack.c.bf16 %v203_v1, %v203_v1  ;;  %v201_v4 = vld [vmem:[%s187_s20] sm:$0xff] }
  0x10   : > { %v202_v5 = vpack.c.bf16 %v201_v4, %v201_v4  ;;  %v205_v17 = vld [vmem:[%s195_s23] sm:$0xff] }
  0x11   : > { %v212_v3 = vsel %vm207_vm1, %v204_v2, 0  ;;  %v206_v18 = vpack.c.bf16 %v205_v17, %v205_v17 }
  0x12   : > { %411 = vmatpush3.bf16.xpose.msra.mxu0 %v212_v3 }
  0x13   : > { %v273_v19 = vsel %vm271_vm3, %v206_v18, 0 }
  0x14   : > { %417 = vmatpush3.bf16.msra.mxu1 %v273_v19 }
  0x19   : > { %413 = vmatmul.mubr.msk.bf16.vlgmr.msra.gmra.mxu0 %vm207_vm1, %v202_v5 }
  0xd9   : > { %v248_v6 = vpop.f32.mrf.mxu0 }
  0xda   : > { %v254_v7 = vmul.f32 0.17677669, %v248_v6 }
  0xdb   : > { %v414_v8 = vpop.f32.mrf.mxu0 }
  0xdc   : > { %v256_v9 = vsel %vm255_vm2, %v254_v7, -inf }
  0xdd   : > { %257 = vmax.xlane.f32.xlu0 %v256_v9  ;;  %v251_v10 = vpop.f32.mrf.mxu0 }
  0xdf   : > { %v415_v11 = vpop.f32.mrf.mxu0 }
 0x166   : > { %v258_v12 = vpop.xlane.xlu0 %257 }
 0x167   : > { %v259_v13 = vsub.f32 %v254_v7, %v258_v12 }
 0x169   : > { %v260_v14 = vmul.f32 1.442695, %v259_v13 }
 0x16b   : > { %432 = vpow2.f32 %v260_v14 }
 0x178   : > { %v433_v15 = vpop.eup %432 }
 0x179   : > { %v262_v16 = vsel %vm255_vm2, %v433_v15, 0.0 }
 0x17a   : > { %263 = vadd.xlane.f32.xlu0 %v262_v16 }
 0x203   : > { %v264_v20 = vpop.xlane.xlu0 %263 }
 0x204   : > { %434 = vrcp.f32 %v264_v20 }
 0x211   : > { %v435_v21 = vpop.eup %434 }
 0x212   : > { %v266_v22 = vmul.f32 %v435_v21, %v433_v15 }
 0x214   : > { %v267_v23 = vpack.c.bf16 %v266_v22, %v266_v22 }
 0x216   : > { %419 = vmatmul.mubr.msk.bf16.vlgmr.msra.gmra.mxu1 %vm255_vm2, %v267_v23 }
 0x2d6   : > { %v309_v24 = vpop.f32.mrf.mxu1 }
 0x2d7   : > { %315 = vst.msk [vmem:[%s199_s26] sm:$0xff] %vm207_vm1, %v309_v24 }
 0x2d8   : > { %v420_v25 = vpop.f32.mrf.mxu1 }
 0x2da   : > { %v312_v26 = vpop.f32.mrf.mxu1 }
 0x2dc   : > { %v421_v27 = vpop.f32.mrf.mxu1 }
 0x2dd PF: > { %s13_s12 = sadd.s32 1, %s442_s12  }
 0x2de   : > { %p10_p4 = scmp.ge.s32.totalorder %s13_s12, 10  }
 0x2e0   :  { %12 = sbr.rel (!%p10_p4) target bundleno = 1 (0x1), region = 68 }

// kernel: transformer_decoder_forward.18
= control target key start
LH: loop header
LB: loop body
LE: loop exit
PB: predicated region body
PF: predicated region fallthrough
CT: control target
= control target key end

     0   :  { %v244_v0 = vmov 0.0   ;;  %vm245_vm0 = vmmov 0   ;;  %s332_s1 = inlined_call_operand.vmem [shape: bf16[128,128], index: 1, kind: input, shape index: {}]   ;;  %s333_s0 = inlined_call_operand.vmem [shape: f32[16,128], index: 0, kind: input, shape index: {}]   ;;  %s334_s2 = inlined_call_operand.vmem [shape: f32[1,128], index: 2, kind: input, shape index: {}]   ;;  %s335_s3 = inlined_call_operand.vmem [shape: f32[16,128], index: 3, kind: input, shape index: {}]   ;;  %s336_s4 = inlined_call_operand.vmem [shape: f32[1,128], index: 4, kind: input, shape index: {}]   ;;  %s337_s5 = inlined_call_operand.vmem [shape: f32[1,128], index: 5, kind: input, shape index: {}]   ;;  %s338_s6 = inlined_call_operand.vmem [shape: f32[16,128], index: 6, kind: output, shape index: {}]  }
   0x1   :  { %210 = vmatprep.subr.bf16.mxu0 %v244_v0  ;;  %v232_v1 = vld [vmem:[%s332_s1 + $0x38] sm:$0xff]   ;;  %226 = vmatprep.mubr.msk.bf16.mxu0 %vm245_vm0, %v244_v0  ;;  %v233_v2 = vld [vmem:[%s332_s1 + $0x30] sm:$0xff]   ;;  %v234_v3 = vld [vmem:[%s332_s1 + $0x28] sm:$0xff]  }
   0x2   :  { %211 = vmatpush3.bf16.msra.mxu0 %v232_v1  ;;  %v235_v4 = vld [vmem:[%s332_s1 + $0x20] sm:$0xff]   ;;  %v236_v5 = vld [vmem:[%s332_s1 + $0x18] sm:$0xff]   ;;  %v237_v6 = vld [vmem:[%s332_s1 + $0x10] sm:$0xff]  }
   0x3   :  { %212 = vmatprep.subr.bf16.mxu0 %v244_v0  ;;  %v238_v7 = vld [vmem:[%s332_s1 + $0x8] sm:$0xff]   ;;  %v239_v8 = vld [vmem:[%s332_s1] sm:$0xff]  }
   0x4   :  { %v24_v9 = vld [vmem:[%s333_s0] sm:$0xff]  ;;  %v25_v10 = vld [vmem:[%s333_s0 + $0x8] sm:$0xff] }
   0x5   :  { %v26_v11 = vpack.c.bf16 %v25_v10, %v24_v9  ;;  %v190_v12 = vld [vmem:[%s334_s2] ss:$0 sm:$0xff]  ;;  %v140_v19 = vld [vmem:[%s335_s3 + $0x8] sm:$0xff] }
   0x6   :  { %213 = vmatpush3.bf16.msra.mxu0 %v233_v2  ;;  %v139_v14 = vld [vmem:[%s335_s3] sm:$0xff] }
   0x7   :  { %214 = vmatprep.subr.bf16.mxu0 %v244_v0  ;;  %v199_v38 = vld [vmem:[%s336_s4] ss:$0 sm:$0xff] }
   0x8   :  { %v200_v40 = vld [vmem:[%s337_s5] ss:$0 sm:$0xff] }
   0xa   :  { %215 = vmatpush3.bf16.msra.mxu0 %v234_v3 }
   0xb   :  { %216 = vmatprep.subr.bf16.mxu0 %v244_v0 }
   0xe   :  { %217 = vmatpush3.bf16.msra.mxu0 %v235_v4 }
   0xf   :  { %218 = vmatprep.subr.bf16.mxu0 %v244_v0 }
  0x12   :  { %219 = vmatpush3.bf16.msra.mxu0 %v236_v5 }
  0x13   :  { %220 = vmatprep.subr.bf16.mxu0 %v244_v0 }
  0x16   :  { %221 = vmatpush3.bf16.msra.mxu0 %v237_v6 }
  0x17   :  { %222 = vmatprep.subr.bf16.mxu0 %v244_v0 }
  0x1a   :  { %223 = vmatpush3.bf16.msra.mxu0 %v238_v7 }
  0x1b   :  { %224 = vmatprep.subr.bf16.mxu0 %v244_v0 }
  0x1e   :  { %225 = vmatpush3.bf16.msra.mxu0 %v239_v8 }
  0x21   :  { %227 = vmatmul.mubr.bf16.vlgmr.msra.gmra.mxu0 %v26_v11 }
  0xe1   :  { %v132_v13 = vpop.f32.mrf.mxu0 }
  0xe2   :  { %v133_v15 = vadd.f32 %v190_v12, %v132_v13 }
  0xe3   :  { %v228_v16 = vpop.f32.mrf.mxu0 }
  0xe4   :  { %v141_v17 = vadd.f32 %v139_v14, %v133_v15 }
  0xe5   :  { %v135_v18 = vpop.f32.mrf.mxu0 }
  0xe6   :  { %v136_v20 = vadd.f32 %v190_v12, %v135_v18  ;;  %143 = vadd.xlane.f32.xlu0 %v141_v17 }
  0xe7   :  { %v229_v21 = vpop.f32.mrf.mxu0 }
  0xe8   :  { %v142_v22 = vadd.f32 %v140_v19, %v136_v20 }
  0xea   :  { %145 = vadd.xlane.f32.xlu0 %v142_v22 }
 0x16f   :  { %v144_v23 = vpop.xlane.xlu0 %143 }
 0x170   :  { %v148_v24 = vmul.f32 0.0078125, %v144_v23 }
 0x172   :  { %v150_v25 = vsub.f32 %v141_v17, %v148_v24 }
 0x173   :  { %v146_v26 = vpop.xlane.xlu0 %145 }
 0x174   :  { %v149_v27 = vmul.f32 0.0078125, %v146_v26  ;;  %v152_v28 = vmul.f32 %v150_v25, %v150_v25 }
 0x176   :  { %v151_v29 = vsub.f32 %v142_v22, %v149_v27  ;;  %154 = vadd.xlane.f32.xlu1 %v152_v28 }
 0x178   :  { %v153_v30 = vmul.f32 %v151_v29, %v151_v29 }
 0x17a   :  { %156 = vadd.xlane.f32.xlu1 %v153_v30 }
 0x1ff   :  { %v155_v31 = vpop.xlane.xlu1 %154 }
 0x200   :  { %v158_v32 = vmul.f32 0.0078125, %v155_v31 }
 0x202   :  { %v160_v33 = vadd.f32 1e-05, %v158_v32 }
 0x203   :  { %v157_v34 = vpop.xlane.xlu1 %156 }
 0x204   :  { %240 = vrsqrt.f32 %v160_v33  ;;  %v159_v35 = vmul.f32 0.0078125, %v157_v34 }
 0x206   :  { %v161_v36 = vadd.f32 1e-05, %v159_v35 }
 0x208   :  { %242 = vrsqrt.f32 %v161_v36 }
 0x211   :  { %v241_v37 = vpop.eup %240 }
 0x212   :  { %v164_v39 = vmul.f32 %v241_v37, %v150_v25 }
 0x214   :  { %v173_v41 = vmul.f32 %v199_v38, %v164_v39 }
 0x215   :  { %v243_v42 = vpop.eup %242 }
 0x216   :  { %v182_v43 = vadd.f32 %v200_v40, %v173_v41  ;;  %v165_v44 = vmul.f32 %v243_v42, %v151_v29 }
 0x218   :  { %184 = vst [vmem:[%s338_s6] sm:$0xff] %v182_v43  ;;  %v174_v45 = vmul.f32 %v199_v38, %v165_v44 }
 0x21a   :  { %v183_v46 = vadd.f32 %v200_v40, %v174_v45 }
 0x21c   :  { %185 = vst [vmem:[%s338_s6 + $0x8] sm:$0xff] %v183_v46 }

// kernel: transformer_decoder_forward.16
= control target key start
LH: loop header
LB: loop body
LE: loop exit
PB: predicated region body
PF: predicated region fallthrough
CT: control target
= control target key end

     0   :  { %8 = vsyncpa [#allocation3], 0  ;;  %s417_s12 = smov [#allocation2]   ;;  %s473_s0 = inlined_call_operand.vmem [shape: f32[16,128], index: 0, kind: input, shape index: {}]   ;;  %s474_s1 = inlined_call_operand.hbm [shape: bf16[128,384], index: 1, kind: input, shape index: {}]   ;;  %s475_s2 = inlined_call_operand.vmem [shape: f32[1,384], index: 2, kind: input, shape index: {}]   ;;  %s476_s3 = inlined_call_operand.vmem [shape: f32[16,384], index: 3, kind: output, shape index: {}]  }
   0x1   :  { %s16_s13 = sshll.u32 %s417_s12, 4  ;;  %s17_s13 = int_to_ptr.vmem [resolvable:$true] %s16_s13 }
   0x2   :  { %s403_s14 = scalar_lea.vmem %s17_s13, 3072  ;;  %p408_p1 = scmp.lt.s32.totalorder %s17_s13, %s17_s13 }
   0x3   :  { %p404_p0 = scmp.ne.s32.totalorder %s17_s13, %s403_s14  ;;  %p409_p2 = scmp.lt.s32.totalorder %s403_s14, %s403_s14 }
   0x5   :  { %p410_p3 = por %p409_p2, %p408_p1 }
   0x7   :  { %p411_p4 = pnand %p410_p3, %p404_p0 }
   0x9   :  { %414 = shalt.err (!%p411_p4)
}
   0xa   :  { %s418_s15 = smov 192   ;;  %s419_s16 = smov 12  }
   0xb   :  { %22 = dma.hbm_to_vmem [thread:$0]  %s474_s1, 3072, %s17_s13, [#allocation3], %s418_s15, %s418_s15, %s419_s16  }
   0xc   :  { %415 = dma.done.wait [#allocation3], 3072  }
   0xd   :  { %416 = vsyncadd [#allocation3], 4294964224  ;;  %v420_v0 = vmov 0.0   ;;  %vm421_vm0 = vmmov 0   ;;  %v422_v1 = vmov 0   ;;  %v29_v25 = vld [vmem:[%s473_s0] sm:$0xff]  ;;  %v66_v29 = vlaneseq }
   0xe   :  { %337 = vmatprep.subr.bf16.mxu1 %v420_v0  ;;  %353 = vmatprep.mubr.msk.bf16.mxu1 %vm421_vm0, %v420_v0  ;;  %v363_v2 = vld [vmem:[#allocation2 + $0xac] ss:$12 sps:$4 sm:$0xff]   ;;  %v365_v3 = vld [vmem:[#allocation2 + $0xb0] ss:$12 sps:$4 sm:$0xff]   ;;  %v366_v4 = vld [vmem:[#allocation2 + $0xa8] ss:$12 sps:$4 sm:$0xff]  }
   0xf   :  { %241 = vmatprep.mubr.bf16.mxu0 %v422_v1  ;;  %209 = vmatprep.subr.bf16.mxu0 %v363_v2  ;;  %v367_v5 = vld [vmem:[#allocation2 + $0x94] ss:$12 sps:$4 sm:$0xff]   ;;  %v369_v6 = vld [vmem:[#allocation2 + $0x98] ss:$12 sps:$4 sm:$0xff]   ;;  %v370_v7 = vld [vmem:[#allocation2 + $0x90] ss:$12 sps:$4 sm:$0xff]  }
  0x10   :  { %338 = vmatpush3.bf16.msra.mxu1 %v365_v3  ;;  %210 = vmatpush1.bf16.msra.mxu0 %v366_v4  ;;  %v371_v8 = vld [vmem:[#allocation2 + $0x7c] ss:$12 sps:$4 sm:$0xff]   ;;  %v373_v9 = vld [vmem:[#allocation2 + $0x80] ss:$12 sps:$4 sm:$0xff]   ;;  %v374_v10 = vld [vmem:[#allocation2 + $0x78] ss:$12 sps:$4 sm:$0xff]  }
  0x11   :  { %339 = vmatprep.subr.bf16.mxu1 %v420_v0  ;;  %211 = vmatprep.subr.bf16.mxu0 %v367_v5  ;;  %v375_v11 = vld [vmem:[#allocation2 + $0x64] ss:$12 sps:$4 sm:$0xff]   ;;  %v377_v12 = vld [vmem:[#allocation2 + $0x68] ss:$12 sps:$4 sm:$0xff]   ;;  %v378_v13 = vld [vmem:[#allocation2 + $0x60] ss:$12 sps:$4 sm:$0xff]  }
  0x12   :  { %v379_v14 = vld [vmem:[#allocation2 + $0x4c] ss:$12 sps:$4 sm:$0xff]   ;;  %v381_v15 = vld [vmem:[#allocation2 + $0x50] ss:$12 sps:$4 sm:$0xff]   ;;  %v382_v16 = vld [vmem:[#allocation2 + $0x48] ss:$12 sps:$4 sm:$0xff]  }
  0x13   :  { %v383_v17 = vld [vmem:[#allocation2 + $0x34] ss:$12 sps:$4 sm:$0xff]   ;;  %v385_v18 = vld [vmem:[#allocation2 + $0x38] ss:$12 sps:$4 sm:$0xff]   ;;  %v386_v19 = vld [vmem:[#allocation2 + $0x30] ss:$12 sps:$4 sm:$0xff]  }
  0x14   :  { %340 = vmatpush3.bf16.msra.mxu1 %v369_v6  ;;  %212 = vmatpush1.bf16.msra.mxu0 %v370_v7  ;;  %v387_v20 = vld [vmem:[#allocation2 + $0x1c] ss:$12 sps:$4 sm:$0xff]   ;;  %v389_v21 = vld [vmem:[#allocation2 + $0x20] ss:$12 sps:$4 sm:$0xff]   ;;  %v390_v22 = vld [vmem:[#allocation2 + $0x18] ss:$12 sps:$4 sm:$0xff]  }
  0x15   :  { %341 = vmatprep.subr.bf16.mxu1 %v420_v0  ;;  %213 = vmatprep.subr.bf16.mxu0 %v371_v8  ;;  %v391_v23 = vld [vmem:[#allocation2 + $0x4] ss:$12 sps:$4 sm:$0xff]   ;;  %v393_v24 = vld [vmem:[#allocation2 + $0x8] ss:$12 sps:$4 sm:$0xff]   ;;  %v394_v27 = vld [vmem:[#allocation2] ss:$12 sps:$4 sm:$0xff]  }
  0x16   :  { %v30_v26 = vld [vmem:[%s473_s0 + $0x8] sm:$0xff]  ;;  %v67_v30 = vshrl.u32 %v66_v29, 7  ;;  %v64_v33 = vld [vmem:[%s475_s2] sm:$0x7] }
  0x17   :  { %v31_v28 = vpack.c.bf16 %v30_v26, %v29_v25 }
  0x18   :  { %342 = vmatpush3.bf16.msra.mxu1 %v373_v9  ;;  %214 = vmatpush1.bf16.msra.mxu0 %v374_v10  ;;  %v76_v31 = vsub.s32 2, %v67_v30  ;;  %v68_v32 = vsub.s32 0, %v67_v30  ;;  %v72_v34 = vsub.s32 1, %v67_v30 }
  0x19   :  { %343 = vmatprep.subr.bf16.mxu1 %v420_v0  ;;  %215 = vmatprep.subr.bf16.mxu0 %v375_v11 }
  0x1a   :  { %v77_v35 = vrot.slane %v64_v33, %v76_v31  ;;  %v69_v36 = vrot.slane %v64_v33, %v68_v32  ;;  %v73_v38 = vrot.slane %v64_v33, %v72_v34 }
  0x1c   :  { %344 = vmatpush3.bf16.msra.mxu1 %v377_v12  ;;  %216 = vmatpush1.bf16.msra.mxu0 %v378_v13 }
  0x1d   :  { %345 = vmatprep.subr.bf16.mxu1 %v420_v0  ;;  %217 = vmatprep.subr.bf16.mxu0 %v379_v14 }
  0x20   :  { %346 = vmatpush3.bf16.msra.mxu1 %v381_v15  ;;  %218 = vmatpush1.bf16.msra.mxu0 %v382_v16 }
  0x21   :  { %347 = vmatprep.subr.bf16.mxu1 %v420_v0  ;;  %219 = vmatprep.subr.bf16.mxu0 %v383_v17 }
  0x24   :  { %348 = vmatpush3.bf16.msra.mxu1 %v385_v18  ;;  %220 = vmatpush1.bf16.msra.mxu0 %v386_v19 }
  0x25   :  { %349 = vmatprep.subr.bf16.mxu1 %v420_v0  ;;  %221 = vmatprep.subr.bf16.mxu0 %v387_v20 }
  0x28   :  { %350 = vmatpush3.bf16.msra.mxu1 %v389_v21  ;;  %222 = vmatpush1.bf16.msra.mxu0 %v390_v22 }
  0x29   :  { %351 = vmatprep.subr.bf16.mxu1 %v420_v0  ;;  %223 = vmatprep.subr.bf16.mxu0 %v391_v23 }
  0x2c   :  { %352 = vmatpush3.bf16.msra.mxu1 %v393_v24  ;;  %224 = vmatpush1.bf16.msra.mxu0 %v394_v27 }
  0x2f   :  { %354 = vmatmul.mubr.bf16.vlgmr.msra.gmra.mxu1 %v31_v28  ;;  %242 = vmatmul.mubr.bf16.vlgmr.msra.gmra.mxu0 %v31_v28 }
  0xef   :  { %v286_v37 = vpop.f32.mrf.mxu1  ;;  %v243_v40 = vpop.f32.mrf.mxu0 }
  0xf0   :  { %v287_v39 = vadd.f32 %v286_v37, %v77_v35  ;;  %v244_v41 = vadd.f32 %v243_v40, %v69_v36 }
  0xf1   :  { %v355_v42 = vpop.f32.mrf.mxu1  ;;  %v245_v43 = vpop.f32.mrf.mxu0 }
  0xf2   :  { %295 = vst [vmem:[%s476_s3 + $0x10] sm:$0xff] %v287_v39  ;;  %293 = vst [vmem:[%s476_s3] sm:$0xff] %v244_v41  ;;  %v246_v44 = vadd.f32 %v245_v43, %v73_v38 }
  0xf3   :  { %v289_v45 = vpop.f32.mrf.mxu1  ;;  %v247_v47 = vpop.f32.mrf.mxu0 }
  0xf4   :  { %v290_v46 = vadd.f32 %v289_v45, %v77_v35  ;;  %294 = vst [vmem:[%s476_s3 + $0x8] sm:$0xff] %v246_v44  ;;  %v248_v48 = vadd.f32 %v247_v47, %v69_v36 }
  0xf5   :  { %v356_v49 = vpop.f32.mrf.mxu1  ;;  %v249_v50 = vpop.f32.mrf.mxu0 }
  0xf6   :  { %298 = vst [vmem:[%s476_s3 + $0x28] sm:$0xff] %v290_v46  ;;  %296 = vst [vmem:[%s476_s3 + $0x18] sm:$0xff] %v248_v48  ;;  %v250_v51 = vadd.f32 %v249_v50, %v73_v38 }
  0xf8   :  { %297 = vst [vmem:[%s476_s3 + $0x20] sm:$0xff] %v250_v51 }
  0xf9   :  { %303 = vsyncpa [#allocation3], 1 }

// kernel: transformer_decoder_forward.20
= control target key start
LH: loop header
LB: loop body
LE: loop exit
PB: predicated region body
PF: predicated region fallthrough
CT: control target
= control target key end

     0   :  { %v251_v1 = vmov 0   ;;  %v39_v23 = vlaneseq  ;;  %s359_s1 = inlined_call_operand.vmem [shape: bf16[128,256], index: 1, kind: input, shape index: {}]   ;;  %s360_s0 = inlined_call_operand.vmem [shape: f32[32,128], index: 0, kind: input, shape index: {}]   ;;  %s361_s2 = inlined_call_operand.vmem [shape: f32[1,256], index: 2, kind: input, shape index: {}]   ;;  %s362_s3 = inlined_call_operand.vmem [shape: f32[32,256], index: 3, kind: output, shape index: {}]  }
   0x1   :  { %v227_v0 = vld [vmem:[%s359_s1 + $0x74] ss:$8 sps:$4 sm:$0xff]   ;;  %161 = vmatprep.mubr.bf16.mxu0 %v251_v1  ;;  %171 = vmatprep.mubr.bf16.mxu1 %v251_v1  ;;  %v229_v2 = vld [vmem:[%s359_s1 + $0x70] ss:$8 sps:$4 sm:$0xff]   ;;  %v230_v3 = vld [vmem:[%s359_s1 + $0x64] ss:$8 sps:$4 sm:$0xff]  }
   0x2   :  { %129 = vmatprep.subr.bf16.mxu0 %v227_v0  ;;  %210 = vmatprep.subr.bf16.mxu1 %v227_v0  ;;  %v232_v4 = vld [vmem:[%s359_s1 + $0x60] ss:$8 sps:$4 sm:$0xff]   ;;  %v233_v5 = vld [vmem:[%s359_s1 + $0x54] ss:$8 sps:$4 sm:$0xff]   ;;  %v235_v6 = vld [vmem:[%s359_s1 + $0x50] ss:$8 sps:$4 sm:$0xff]  }
   0x3   :  { %130 = vmatpush1.bf16.msra.mxu0 %v229_v2  ;;  %218 = vmatpush1.bf16.msra.mxu1 %v229_v2  ;;  %v236_v7 = vld [vmem:[%s359_s1 + $0x44] ss:$8 sps:$4 sm:$0xff]   ;;  %v238_v8 = vld [vmem:[%s359_s1 + $0x40] ss:$8 sps:$4 sm:$0xff]   ;;  %v239_v9 = vld [vmem:[%s359_s1 + $0x34] ss:$8 sps:$4 sm:$0xff]  }
   0x4   :  { %131 = vmatprep.subr.bf16.mxu0 %v230_v3  ;;  %211 = vmatprep.subr.bf16.mxu1 %v230_v3  ;;  %v241_v10 = vld [vmem:[%s359_s1 + $0x30] ss:$8 sps:$4 sm:$0xff]   ;;  %v242_v11 = vld [vmem:[%s359_s1 + $0x24] ss:$8 sps:$4 sm:$0xff]   ;;  %v244_v12 = vld [vmem:[%s359_s1 + $0x20] ss:$8 sps:$4 sm:$0xff]  }
   0x5   :  { %v245_v13 = vld [vmem:[%s359_s1 + $0x14] ss:$8 sps:$4 sm:$0xff]   ;;  %v247_v14 = vld [vmem:[%s359_s1 + $0x10] ss:$8 sps:$4 sm:$0xff]   ;;  %v248_v15 = vld [vmem:[%s359_s1 + $0x4] ss:$8 sps:$4 sm:$0xff]  }
   0x6   :  { %v250_v16 = vld [vmem:[%s359_s1] ss:$8 sps:$4 sm:$0xff]   ;;  %v17_v19 = vld [vmem:[%s360_s0 + $0x10] sm:$0xff]  ;;  %v18_v20 = vld [vmem:[%s360_s0 + $0x18] sm:$0xff]  ;;  %v40_v24 = vshrl.u32 %v39_v23, 7 }
   0x7   :  { %132 = vmatpush1.bf16.msra.mxu0 %v232_v4  ;;  %219 = vmatpush1.bf16.msra.mxu1 %v232_v4  ;;  %v15_v17 = vld [vmem:[%s360_s0] sm:$0xff]  ;;  %v16_v18 = vld [vmem:[%s360_s0 + $0x8] sm:$0xff]  ;;  %v20_v22 = vpack.c.bf16 %v18_v20, %v17_v19 }
   0x8   :  { %133 = vmatprep.subr.bf16.mxu0 %v233_v5  ;;  %212 = vmatprep.subr.bf16.mxu1 %v233_v5  ;;  %v19_v21 = vpack.c.bf16 %v16_v18, %v15_v17  ;;  %v41_v25 = vsub.s32 0, %v40_v24  ;;  %v37_v26 = vld [vmem:[%s361_s2] sm:$0x3]  ;;  %v45_v27 = vsub.s32 1, %v40_v24 }
   0xa   :  { %v42_v28 = vrot.slane %v37_v26, %v41_v25  ;;  %v46_v29 = vrot.slane %v37_v26, %v45_v27 }
   0xb   :  { %134 = vmatpush1.bf16.msra.mxu0 %v235_v6  ;;  %220 = vmatpush1.bf16.msra.mxu1 %v235_v6 }
   0xc   :  { %135 = vmatprep.subr.bf16.mxu0 %v236_v7  ;;  %213 = vmatprep.subr.bf16.mxu1 %v236_v7 }
   0xf   :  { %136 = vmatpush1.bf16.msra.mxu0 %v238_v8  ;;  %221 = vmatpush1.bf16.msra.mxu1 %v238_v8 }
  0x10   :  { %137 = vmatprep.subr.bf16.mxu0 %v239_v9  ;;  %214 = vmatprep.subr.bf16.mxu1 %v239_v9 }
  0x13   :  { %138 = vmatpush1.bf16.msra.mxu0 %v241_v10  ;;  %222 = vmatpush1.bf16.msra.mxu1 %v241_v10 }
  0x14   :  { %139 = vmatprep.subr.bf16.mxu0 %v242_v11  ;;  %215 = vmatprep.subr.bf16.mxu1 %v242_v11 }
  0x17   :  { %140 = vmatpush1.bf16.msra.mxu0 %v244_v12  ;;  %223 = vmatpush1.bf16.msra.mxu1 %v244_v12 }
  0x18   :  { %141 = vmatprep.subr.bf16.mxu0 %v245_v13  ;;  %216 = vmatprep.subr.bf16.mxu1 %v245_v13 }
  0x1b   :  { %142 = vmatpush1.bf16.msra.mxu0 %v247_v14  ;;  %224 = vmatpush1.bf16.msra.mxu1 %v247_v14 }
  0x1c   :  { %143 = vmatprep.subr.bf16.mxu0 %v248_v15  ;;  %217 = vmatprep.subr.bf16.mxu1 %v248_v15 }
  0x1f   :  { %144 = vmatpush1.bf16.msra.mxu0 %v250_v16  ;;  %225 = vmatpush1.bf16.msra.mxu1 %v250_v16 }
  0x22   :  { %162 = vmatmul.mubr.bf16.vlgmr.msra.gmra.mxu0 %v19_v21  ;;  %172 = vmatmul.mubr.bf16.vlgmr.msra.gmra.mxu1 %v20_v22 }
  0xe2   :  { %v163_v30 = vpop.f32.mrf.mxu0  ;;  %v173_v31 = vpop.f32.mrf.mxu1 }
  0xe3   :  { %v164_v32 = vadd.f32 %v163_v30, %v42_v28  ;;  %v174_v33 = vadd.f32 %v173_v31, %v42_v28 }
  0xe4   :  { %v165_v34 = vpop.f32.mrf.mxu0  ;;  %v175_v35 = vpop.f32.mrf.mxu1 }
  0xe5   :  { %182 = vst [vmem:[%s362_s3] sm:$0xff] %v164_v32  ;;  %186 = vst [vmem:[%s362_s3 + $0x20] sm:$0xff] %v174_v33  ;;  %v166_v36 = vadd.f32 %v165_v34, %v46_v29  ;;  %v176_v37 = vadd.f32 %v175_v35, %v46_v29 }
  0xe6   :  { %v167_v38 = vpop.f32.mrf.mxu0  ;;  %v177_v39 = vpop.f32.mrf.mxu1 }
  0xe7   :  { %183 = vst [vmem:[%s362_s3 + $0x8] sm:$0xff] %v166_v36  ;;  %187 = vst [vmem:[%s362_s3 + $0x28] sm:$0xff] %v176_v37  ;;  %v168_v40 = vadd.f32 %v167_v38, %v42_v28  ;;  %v178_v41 = vadd.f32 %v177_v39, %v42_v28 }
  0xe8   :  { %v169_v42 = vpop.f32.mrf.mxu0  ;;  %v179_v43 = vpop.f32.mrf.mxu1 }
  0xe9   :  { %184 = vst [vmem:[%s362_s3 + $0x10] sm:$0xff] %v168_v40  ;;  %188 = vst [vmem:[%s362_s3 + $0x30] sm:$0xff] %v178_v41  ;;  %v170_v44 = vadd.f32 %v169_v42, %v46_v29  ;;  %v180_v45 = vadd.f32 %v179_v43, %v46_v29 }
  0xeb   :  { %185 = vst [vmem:[%s362_s3 + $0x18] sm:$0xff] %v170_v44  ;;  %189 = vst [vmem:[%s362_s3 + $0x38] sm:$0xff] %v180_v45 }

// kernel: transformer_decoder_forward.21
= control target key start
LH: loop header
LB: loop body
LE: loop exit
PB: predicated region body
PF: predicated region fallthrough
CT: control target
= control target key end

     0   :  { %s474_s12 = smov 0   ;;  %s511_s0 = inlined_call_operand.vmem [shape: f32[8,8,32], index: 0, kind: input, shape index: {}]   ;;  %s512_s1 = inlined_call_operand.vmem [shape: f32[8,16,32], index: 1, kind: input, shape index: {}]   ;;  %s513_s2 = inlined_call_operand.vmem [shape: f32[8,16,32], index: 2, kind: input, shape index: {}]   ;;  %s514_s3 = inlined_call_operand.vmem [shape: f32[8,8,32], index: 3, kind: output, shape index: {}]  }
   0x1 LB: > { %s397_s13 = sadd.s32 4294967295, %s450_s12   ;;  %p401_p0 = scmp.ge.s32.totalorder %s450_s12, 1  ;;  %s450_s12 = sphi %s474_s12, %s13_s12  }
   0x2   : > { %p156_p1 = scmp.lt.s32.totalorder %s450_s12, 9 }
   0x4   : > { %p157_p2 = pnand %p401_p0, %p156_p1 }
   0x5   : > { %p188_p3 = scmp.lt.s32.totalorder (!%p157_p2), %s397_s13, 7 }
   0x6   : > { %160 = sbr.rel (%p157_p2) target bundleno = 733 (0x2dd), region = 32 }
   0xb   : > { %v452_v0 = vmov 0.0   ;;  %vm453_vm0 = vmmov 0   ;;  %s516_s13 = smov (!%p188_p3, %s397_s13), 7  ;;  %vm215_vm1 = vcmask 261120   ;;  %vm263_vm2 = vcmask 130048  }
   0xc   : > { %418 = vmatprep.subr.bf16.mxu0 %v452_v0  ;;  %420 = vmatprep.mubr.msk.bf16.mxu0 %vm453_vm0, %v452_v0  ;;  %s412_s14 = sshll.u32 %s516_s13, 4  ;;  %s402_s15 = sshll.u32 %s516_s13, 3 }
   0xd   : > { %424 = vmatprep.subr.bf16.mxu1 %v452_v0  ;;  %426 = vmatprep.mubr.msk.bf16.mxu1 %vm453_vm0, %v452_v0  ;;  %s196_s18 = scalar_lea.vmem %s512_s1, %s412_s14  ;;  %s191_s21 = scalar_lea.vmem %s511_s0, %s402_s15 }
   0xe   : > { %v209_v1 = vld [vmem:[%s196_s18] sm:$0xff]  ;;  %v210_v2 = vld [vmem:[%s196_s18 + $0x8] sm:$0xff]  ;;  %s201_s24 = scalar_lea.vmem %s513_s2, %s412_s14  ;;  %s205_s27 = scalar_lea.vmem %s514_s3, %s402_s15 }
   0xf   : > { %v211_v3 = vpack.c.bf16 %v210_v2, %v209_v1  ;;  %v207_v5 = vld [vmem:[%s191_s21] sm:$0xff]  ;;  %v213_v19 = vld [vmem:[%s201_s24 + $0x8] sm:$0xff] }
  0x10   : > { %v208_v6 = vpack.c.bf16 %v207_v5, %v207_v5  ;;  %v212_v18 = vld [vmem:[%s201_s24] sm:$0xff] }
  0x11   : > { %v220_v4 = vsel %vm215_vm1, %v211_v3, 0  ;;  %v214_v20 = vpack.c.bf16 %v213_v19, %v212_v18 }
  0x12   : > { %419 = vmatpush3.bf16.xpose.msra.mxu0 %v220_v4 }
  0x13   : > { %425 = vmatpush3.bf16.msra.mxu1 %v214_v20 }
  0x19   : > { %421 = vmatmul.mubr.msk.bf16.vlgmr.msra.gmra.mxu0 %vm215_vm1, %v208_v6 }
  0xd9   : > { %v256_v7 = vpop.f32.mrf.mxu0 }
  0xda   : > { %v262_v8 = vmul.f32 0.17677669, %v256_v7 }
  0xdb   : > { %v422_v9 = vpop.f32.mrf.mxu0 }
  0xdc   : > { %v264_v10 = vsel %vm263_vm2, %v262_v8, -inf }
  0xdd   : > { %265 = vmax.xlane.f32.xlu0 %v264_v10  ;;  %v259_v11 = vpop.f32.mrf.mxu0 }
  0xdf   : > { %v423_v12 = vpop.f32.mrf.mxu0 }
 0x166   : > { %v266_v13 = vpop.xlane.xlu0 %265 }
 0x167   : > { %v267_v14 = vsub.f32 %v262_v8, %v266_v13 }
 0x169   : > { %v268_v15 = vmul.f32 1.442695, %v267_v14 }
 0x16b   : > { %440 = vpow2.f32 %v268_v15 }
 0x178   : > { %v441_v16 = vpop.eup %440 }
 0x179   : > { %v270_v17 = vsel %vm263_vm2, %v441_v16, 0.0 }
 0x17a   : > { %271 = vadd.xlane.f32.xlu0 %v270_v17 }
 0x203   : > { %v272_v21 = vpop.xlane.xlu0 %271 }
 0x204   : > { %442 = vrcp.f32 %v272_v21 }
 0x211   : > { %v443_v22 = vpop.eup %442 }
 0x212   : > { %v274_v23 = vmul.f32 %v443_v22, %v441_v16 }
 0x214   : > { %v275_v24 = vpack.c.bf16 %v274_v23, %v274_v23 }
 0x216   : > { %427 = vmatmul.mubr.msk.bf16.vlgmr.msra.gmra.mxu1 %vm263_vm2, %v275_v24 }
 0x2d6   : > { %v313_v25 = vpop.f32.mrf.mxu1 }
 0x2d7   : > { %319 = vst.msk [vmem:[%s205_s27] sm:$0xff] %vm215_vm1, %v313_v25 }
 0x2d8   : > { %v428_v26 = vpop.f32.mrf.mxu1 }
 0x2da   : > { %v316_v27 = vpop.f32.mrf.mxu1 }
 0x2dc   : > { %v429_v28 = vpop.f32.mrf.mxu1 }
 0x2dd PF: > { %s13_s12 = sadd.s32 1, %s450_s12  }
 0x2de   : > { %p10_p4 = scmp.ge.s32.totalorder %s13_s12, 10  }
 0x2e0   :  { %12 = sbr.rel (!%p10_p4) target bundleno = 1 (0x1), region = 68 }

// kernel: transformer_decoder_forward.24
= control target key start
LH: loop header
LB: loop body
LE: loop exit
PB: predicated region body
PF: predicated region fallthrough
CT: control target
= control target key end

     0   :  { %v377_v0 = vmov 0.0   ;;  %vm378_vm0 = vmmov 0   ;;  %v379_v3 = vmov 0   ;;  %v52_v29 = vlaneseq  ;;  %s499_s1 = inlined_call_operand.vmem [shape: bf16[128,384], index: 1, kind: input, shape index: {}]   ;;  %s500_s0 = inlined_call_operand.vmem [shape: f32[16,128], index: 0, kind: input, shape index: {}]   ;;  %s501_s2 = inlined_call_operand.vmem [shape: f32[1,384], index: 2, kind: input, shape index: {}]   ;;  %s502_s3 = inlined_call_operand.vmem [shape: f32[16,384], index: 3, kind: output, shape index: {}]  }
   0x1   :  { %322 = vmatprep.subr.bf16.mxu1 %v377_v0  ;;  %v345_v1 = vld [vmem:[%s499_s1 + $0xac] ss:$12 sps:$4 sm:$0xff]   ;;  %338 = vmatprep.mubr.msk.bf16.mxu1 %vm378_vm0, %v377_v0  ;;  %v347_v2 = vld [vmem:[%s499_s1 + $0xb0] ss:$12 sps:$4 sm:$0xff]   ;;  %v348_v4 = vld [vmem:[%s499_s1 + $0xa8] ss:$12 sps:$4 sm:$0xff]  }
   0x2   :  { %227 = vmatprep.mubr.bf16.mxu0 %v379_v3  ;;  %195 = vmatprep.subr.bf16.mxu0 %v345_v1  ;;  %v349_v5 = vld [vmem:[%s499_s1 + $0x94] ss:$12 sps:$4 sm:$0xff]   ;;  %v351_v6 = vld [vmem:[%s499_s1 + $0x98] ss:$12 sps:$4 sm:$0xff]   ;;  %v352_v7 = vld [vmem:[%s499_s1 + $0x90] ss:$12 sps:$4 sm:$0xff]  }
   0x3   :  { %323 = vmatpush3.bf16.msra.mxu1 %v347_v2  ;;  %196 = vmatpush1.bf16.msra.mxu0 %v348_v4  ;;  %v353_v8 = vld [vmem:[%s499_s1 + $0x7c] ss:$12 sps:$4 sm:$0xff]   ;;  %v355_v9 = vld [vmem:[%s499_s1 + $0x80] ss:$12 sps:$4 sm:$0xff]   ;;  %v356_v10 = vld [vmem:[%s499_s1 + $0x78] ss:$12 sps:$4 sm:$0xff]  }
   0x4   :  { %324 = vmatprep.subr.bf16.mxu1 %v377_v0  ;;  %197 = vmatprep.subr.bf16.mxu0 %v349_v5  ;;  %v357_v11 = vld [vmem:[%s499_s1 + $0x64] ss:$12 sps:$4 sm:$0xff]   ;;  %v359_v12 = vld [vmem:[%s499_s1 + $0x68] ss:$12 sps:$4 sm:$0xff]   ;;  %v360_v13 = vld [vmem:[%s499_s1 + $0x60] ss:$12 sps:$4 sm:$0xff]  }
   0x5   :  { %v361_v14 = vld [vmem:[%s499_s1 + $0x4c] ss:$12 sps:$4 sm:$0xff]   ;;  %v363_v15 = vld [vmem:[%s499_s1 + $0x50] ss:$12 sps:$4 sm:$0xff]   ;;  %v364_v16 = vld [vmem:[%s499_s1 + $0x48] ss:$12 sps:$4 sm:$0xff]  }
   0x6   :  { %v365_v17 = vld [vmem:[%s499_s1 + $0x34] ss:$12 sps:$4 sm:$0xff]   ;;  %v367_v18 = vld [vmem:[%s499_s1 + $0x38] ss:$12 sps:$4 sm:$0xff]   ;;  %v368_v19 = vld [vmem:[%s499_s1 + $0x30] ss:$12 sps:$4 sm:$0xff]  }
   0x7   :  { %325 = vmatpush3.bf16.msra.mxu1 %v351_v6  ;;  %198 = vmatpush1.bf16.msra.mxu0 %v352_v7  ;;  %v369_v20 = vld [vmem:[%s499_s1 + $0x1c] ss:$12 sps:$4 sm:$0xff]   ;;  %v371_v21 = vld [vmem:[%s499_s1 + $0x20] ss:$12 sps:$4 sm:$0xff]   ;;  %v372_v22 = vld [vmem:[%s499_s1 + $0x18] ss:$12 sps:$4 sm:$0xff]  }
   0x8   :  { %326 = vmatprep.subr.bf16.mxu1 %v377_v0  ;;  %199 = vmatprep.subr.bf16.mxu0 %v353_v8  ;;  %v373_v23 = vld [vmem:[%s499_s1 + $0x4] ss:$12 sps:$4 sm:$0xff]   ;;  %v375_v24 = vld [vmem:[%s499_s1 + $0x8] ss:$12 sps:$4 sm:$0xff]   ;;  %v376_v27 = vld [vmem:[%s499_s1] ss:$12 sps:$4 sm:$0xff]  }
   0x9   :  { %v15_v25 = vld [vmem:[%s500_s0] sm:$0xff]  ;;  %v16_v26 = vld [vmem:[%s500_s0 + $0x8] sm:$0xff]  ;;  %v53_v30 = vshrl.u32 %v52_v29, 7 }
   0xa   :  { %v17_v28 = vpack.c.bf16 %v16_v26, %v15_v25  ;;  %v50_v33 = vld [vmem:[%s501_s2] sm:$0x7] }
   0xb   :  { %327 = vmatpush3.bf16.msra.mxu1 %v355_v9  ;;  %200 = vmatpush1.bf16.msra.mxu0 %v356_v10  ;;  %v62_v31 = vsub.s32 2, %v53_v30  ;;  %v54_v32 = vsub.s32 0, %v53_v30  ;;  %v58_v34 = vsub.s32 1, %v53_v30 }
   0xc   :  { %328 = vmatprep.subr.bf16.mxu1 %v377_v0  ;;  %201 = vmatprep.subr.bf16.mxu0 %v357_v11 }
   0xd   :  { %v63_v35 = vrot.slane %v50_v33, %v62_v31  ;;  %v55_v36 = vrot.slane %v50_v33, %v54_v32  ;;  %v59_v38 = vrot.slane %v50_v33, %v58_v34 }
   0xf   :  { %329 = vmatpush3.bf16.msra.mxu1 %v359_v12  ;;  %202 = vmatpush1.bf16.msra.mxu0 %v360_v13 }
  0x10   :  { %330 = vmatprep.subr.bf16.mxu1 %v377_v0  ;;  %203 = vmatprep.subr.bf16.mxu0 %v361_v14 }
  0x13   :  { %331 = vmatpush3.bf16.msra.mxu1 %v363_v15  ;;  %204 = vmatpush1.bf16.msra.mxu0 %v364_v16 }
  0x14   :  { %332 = vmatprep.subr.bf16.mxu1 %v377_v0  ;;  %205 = vmatprep.subr.bf16.mxu0 %v365_v17 }
  0x17   :  { %333 = vmatpush3.bf16.msra.mxu1 %v367_v18  ;;  %206 = vmatpush1.bf16.msra.mxu0 %v368_v19 }
  0x18   :  { %334 = vmatprep.subr.bf16.mxu1 %v377_v0  ;;  %207 = vmatprep.subr.bf16.mxu0 %v369_v20 }
  0x1b   :  { %335 = vmatpush3.bf16.msra.mxu1 %v371_v21  ;;  %208 = vmatpush1.bf16.msra.mxu0 %v372_v22 }
  0x1c   :  { %336 = vmatprep.subr.bf16.mxu1 %v377_v0  ;;  %209 = vmatprep.subr.bf16.mxu0 %v373_v23 }
  0x1f   :  { %337 = vmatpush3.bf16.msra.mxu1 %v375_v24  ;;  %210 = vmatpush1.bf16.msra.mxu0 %v376_v27 }
  0x22   :  { %339 = vmatmul.mubr.bf16.vlgmr.msra.gmra.mxu1 %v17_v28  ;;  %228 = vmatmul.mubr.bf16.vlgmr.msra.gmra.mxu0 %v17_v28 }
  0xe2   :  { %v272_v37 = vpop.f32.mrf.mxu1  ;;  %v229_v40 = vpop.f32.mrf.mxu0 }
  0xe3   :  { %v273_v39 = vadd.f32 %v272_v37, %v63_v35  ;;  %v230_v41 = vadd.f32 %v229_v40, %v55_v36 }
  0xe4   :  { %v340_v42 = vpop.f32.mrf.mxu1  ;;  %v231_v43 = vpop.f32.mrf.mxu0 }
  0xe5   :  { %281 = vst [vmem:[%s502_s3 + $0x10] sm:$0xff] %v273_v39  ;;  %279 = vst [vmem:[%s502_s3] sm:$0xff] %v230_v41  ;;  %v232_v44 = vadd.f32 %v231_v43, %v59_v38 }
  0xe6   :  { %v275_v45 = vpop.f32.mrf.mxu1  ;;  %v233_v47 = vpop.f32.mrf.mxu0 }
  0xe7   :  { %v276_v46 = vadd.f32 %v275_v45, %v63_v35  ;;  %280 = vst [vmem:[%s502_s3 + $0x8] sm:$0xff] %v232_v44  ;;  %v234_v48 = vadd.f32 %v233_v47, %v55_v36 }
  0xe8   :  { %v341_v49 = vpop.f32.mrf.mxu1  ;;  %v235_v50 = vpop.f32.mrf.mxu0 }
  0xe9   :  { %284 = vst [vmem:[%s502_s3 + $0x28] sm:$0xff] %v276_v46  ;;  %282 = vst [vmem:[%s502_s3 + $0x18] sm:$0xff] %v234_v48  ;;  %v236_v51 = vadd.f32 %v235_v50, %v59_v38 }
  0xeb   :  { %283 = vst [vmem:[%s502_s3 + $0x20] sm:$0xff] %v236_v51 }

// kernel: transformer_decoder_forward.23
= control target key start
LH: loop header
LB: loop body
LE: loop exit
PB: predicated region body
PF: predicated region fallthrough
CT: control target
= control target key end

     0   :  { %v514_v1 = vmov 0   ;;  %v48_v36 = vlaneseq  ;;  %s675_s1 = inlined_call_operand.vmem [shape: bf16[128,256], index: 1, kind: input, shape index: {}]   ;;  %s676_s3 = inlined_call_operand.vmem [shape: bf16[256,128], index: 3, kind: input, shape index: {}]   ;;  %s677_s0 = inlined_call_operand.vmem [shape: f32[16,128], index: 0, kind: input, shape index: {}]   ;;  %s678_s2 = inlined_call_operand.vmem [shape: f32[1,256], index: 2, kind: input, shape index: {}]   ;;  %s679_s4 = inlined_call_operand.vmem [shape: f32[1,128], index: 4, kind: input, shape index: {}]   ;;  %s680_s5 = inlined_call_operand.vmem [shape: f32[1,128], index: 5, kind: input, shape index: {}]   ;;  %s681_s6 = inlined_call_operand.vmem [shape: f32[1,128], index: 6, kind: input, shape index: {}]   ;;  %s682_s7 = inlined_call_operand.vmem [shape: f32[16,128], index: 7, kind: output, shape index: {}]  }
   0x1   :  { %v470_v0 = vld [vmem:[%s675_s1 + $0x74] ss:$8 sps:$4 sm:$0xff]   ;;  %170 = vmatprep.mubr.bf16.mxu0 %v514_v1  ;;  %v472_v2 = vld [vmem:[%s675_s1 + $0x70] ss:$8 sps:$4 sm:$0xff]   ;;  %v473_v3 = vld [vmem:[%s675_s1 + $0x64] ss:$8 sps:$4 sm:$0xff]  }
   0x2   :  { %138 = vmatprep.subr.bf16.mxu0 %v470_v0  ;;  %v475_v4 = vld [vmem:[%s675_s1 + $0x60] ss:$8 sps:$4 sm:$0xff]   ;;  %v476_v5 = vld [vmem:[%s675_s1 + $0x54] ss:$8 sps:$4 sm:$0xff]   ;;  %v478_v6 = vld [vmem:[%s675_s1 + $0x50] ss:$8 sps:$4 sm:$0xff]  }
   0x3   :  { %139 = vmatpush1.bf16.msra.mxu0 %v472_v2  ;;  %v479_v7 = vld [vmem:[%s675_s1 + $0x44] ss:$8 sps:$4 sm:$0xff]   ;;  %v481_v8 = vld [vmem:[%s675_s1 + $0x40] ss:$8 sps:$4 sm:$0xff]   ;;  %v482_v9 = vld [vmem:[%s675_s1 + $0x34] ss:$8 sps:$4 sm:$0xff]  }
   0x4   :  { %140 = vmatprep.subr.bf16.mxu0 %v473_v3  ;;  %v494_v10 = vld [vmem:[%s676_s3 + $0x78] sm:$0xff]   ;;  %v485_v13 = vld [vmem:[%s675_s1 + $0x24] ss:$8 sps:$4 sm:$0xff]   ;;  %v496_v14 = vld [vmem:[%s676_s3 + $0x70] sm:$0xff]   ;;  %v49_v37 = vshrl.u32 %v48_v36, 7 }
   0x5   :  { %v484_v11 = vld [vmem:[%s675_s1 + $0x30] ss:$8 sps:$4 sm:$0xff]   ;;  %447 = vmatprep.subr.bf16.mxu1 %v494_v10  ;;  %v498_v16 = vld [vmem:[%s676_s3 + $0x68] sm:$0xff]   ;;  %v488_v18 = vld [vmem:[%s675_s1 + $0x14] ss:$8 sps:$4 sm:$0xff]  }
   0x6   :  { %v495_v12 = vld [vmem:[%s676_s3 + $0x38] sm:$0xff]   ;;  %v497_v15 = vld [vmem:[%s676_s3 + $0x30] sm:$0xff]   ;;  %v487_v17 = vld [vmem:[%s675_s1 + $0x20] ss:$8 sps:$4 sm:$0xff]   ;;  %v54_v38 = vsub.s32 1, %v49_v37  ;;  %v50_v39 = vsub.s32 0, %v49_v37 }
   0x7   :  { %141 = vmatpush1.bf16.msra.mxu0 %v475_v4  ;;  %448 = vmatpush3.bf16.msra.mxu1 %v495_v12  ;;  %v499_v19 = vld [vmem:[%s676_s3 + $0x28] sm:$0xff]   ;;  %v500_v20 = vld [vmem:[%s676_s3 + $0x60] sm:$0xff]   ;;  %v490_v21 = vld [vmem:[%s675_s1 + $0x10] ss:$8 sps:$4 sm:$0xff]  }
   0x8   :  { %142 = vmatprep.subr.bf16.mxu0 %v476_v5  ;;  %449 = vmatprep.subr.bf16.mxu1 %v496_v14  ;;  %v501_v22 = vld [vmem:[%s676_s3 + $0x20] sm:$0xff]   ;;  %v502_v24 = vld [vmem:[%s676_s3 + $0x58] sm:$0xff]   ;;  %v28_v27 = vld [vmem:[%s677_s0 + $0x8] sm:$0xff] }
   0x9   :  { %v491_v23 = vld [vmem:[%s675_s1 + $0x4] ss:$8 sps:$4 sm:$0xff]   ;;  %v493_v25 = vld [vmem:[%s675_s1] ss:$8 sps:$4 sm:$0xff]   ;;  %v503_v28 = vld [vmem:[%s676_s3 + $0x18] sm:$0xff]  }
   0xa   :  { %v27_v26 = vld [vmem:[%s677_s0] sm:$0xff]  ;;  %v504_v30 = vld [vmem:[%s676_s3 + $0x50] sm:$0xff]   ;;  %v506_v32 = vld [vmem:[%s676_s3 + $0x48] sm:$0xff]  }
   0xb   :  { %143 = vmatpush1.bf16.msra.mxu0 %v478_v6  ;;  %450 = vmatpush3.bf16.msra.mxu1 %v497_v15  ;;  %v29_v29 = vpack.c.bf16 %v28_v27, %v27_v26  ;;  %v505_v31 = vld [vmem:[%s676_s3 + $0x10] sm:$0xff]   ;;  %v507_v33 = vld [vmem:[%s676_s3 + $0x8] sm:$0xff]   ;;  %v508_v34 = vld [vmem:[%s676_s3 + $0x40] sm:$0xff]  }
   0xc   :  { %144 = vmatprep.subr.bf16.mxu0 %v479_v7  ;;  %451 = vmatprep.subr.bf16.mxu1 %v498_v16  ;;  %v509_v35 = vld [vmem:[%s676_s3] sm:$0xff]  }
   0xd   :  { %v46_v40 = vld [vmem:[%s678_s2] sm:$0x3] }
   0xe   :  { %v55_v42 = vrot.slane %v46_v40, %v54_v38  ;;  %v51_v43 = vrot.slane %v46_v40, %v50_v39  ;;  %v428_v58 = vld [vmem:[%s679_s4] ss:$0 sm:$0xff] }
   0xf   :  { %145 = vmatpush1.bf16.msra.mxu0 %v481_v8  ;;  %452 = vmatpush3.bf16.msra.mxu1 %v499_v19  ;;  %v445_v19 = vld [vmem:[%s680_s5] ss:$0 sm:$0xff] }
  0x10   :  { %146 = vmatprep.subr.bf16.mxu0 %v482_v9  ;;  %453 = vmatprep.subr.bf16.mxu1 %v500_v20 }
  0x13   :  { %147 = vmatpush1.bf16.msra.mxu0 %v484_v11  ;;  %454 = vmatpush3.bf16.msra.mxu1 %v501_v22 }
  0x14   :  { %148 = vmatprep.subr.bf16.mxu0 %v485_v13  ;;  %455 = vmatprep.subr.bf16.mxu1 %v502_v24 }
  0x17   :  { %149 = vmatpush1.bf16.msra.mxu0 %v487_v17  ;;  %456 = vmatpush3.bf16.msra.mxu1 %v503_v28 }
  0x18   :  { %150 = vmatprep.subr.bf16.mxu0 %v488_v18  ;;  %457 = vmatprep.subr.bf16.mxu1 %v504_v30 }
  0x1b   :  { %151 = vmatpush1.bf16.msra.mxu0 %v490_v21  ;;  %458 = vmatpush3.bf16.msra.mxu1 %v505_v31  ;;  %v446_v21 = vld [vmem:[%s681_s6] ss:$0 sm:$0xff] }
  0x1c   :  { %152 = vmatprep.subr.bf16.mxu0 %v491_v23  ;;  %459 = vmatprep.subr.bf16.mxu1 %v506_v32 }
  0x1f   :  { %153 = vmatpush1.bf16.msra.mxu0 %v493_v25  ;;  %460 = vmatpush3.bf16.msra.mxu1 %v507_v33 }
  0x20   :  { %461 = vmatprep.subr.bf16.mxu1 %v508_v34 }
  0x22   :  { %171 = vmatmul.mubr.bf16.vlgmr.msra.gmra.mxu0 %v29_v29 }
  0x23   :  { %462 = vmatpush3.bf16.msra.mxu1 %v509_v35 }
  0xe2   :  { %v172_v41 = vpop.f32.mrf.mxu0 }
  0xe3   :  { %v173_v48 = vadd.f32 %v172_v41, %v51_v43 }
  0xe4   :  { %v174_v44 = vpop.f32.mrf.mxu0 }
  0xe5   :  { %v175_v46 = vadd.f32 %v174_v44, %v55_v42  ;;  %v181_v54 = vmax.f32 %v173_v48, 0.0 }
  0xe6   :  { %v176_v45 = vpop.f32.mrf.mxu0 }
  0xe7   :  { %v177_v47 = vadd.f32 %v176_v45, %v51_v43  ;;  %v182_v52 = vmax.f32 %v175_v46, 0.0 }
  0xe8   :  { %v178_v49 = vpop.f32.mrf.mxu0 }
  0xe9   :  { %v179_v50 = vadd.f32 %v178_v49, %v55_v42  ;;  %v183_v51 = vmax.f32 %v177_v47, 0.0 }
  0xeb   :  { %v184_v53 = vmax.f32 %v179_v50, 0.0  ;;  %v185_v56 = vpack.c.bf16 %v183_v51, %v181_v54 }
  0xed   :  { %v186_v55 = vpack.c.bf16 %v184_v53, %v182_v52 }
  0xef   :  { %354 = vmatprep.mubr.bf16.mxu1 %v186_v55 }
  0xf0   :  { %355 = vmatmul.mubr.bf16.vlgmr.msra.gmra.mxu1 %v185_v56 }
 0x1b0   :  { %v463_v57 = vpop.f32.mrf.mxu1 }
 0x1b2   :  { %v464_v59 = vpop.f32.mrf.mxu1 }
 0x1b3   :  { %v465_v60 = vadd.f32 %v464_v59, %v463_v57 }
 0x1b4   :  { %v466_v61 = vpop.f32.mrf.mxu1 }
 0x1b5   :  { %v357_v62 = vadd.f32 %v465_v60, %v428_v58 }
 0x1b6   :  { %v467_v63 = vpop.f32.mrf.mxu1 }
 0x1b7   :  { %v468_v0 = vadd.f32 %v467_v63, %v466_v61  ;;  %v363_v1 = vadd.f32 %v357_v62, %v27_v26 }
 0x1b9   :  { %v360_v2 = vadd.f32 %v468_v0, %v428_v58  ;;  %365 = vadd.xlane.f32.xlu0 %v363_v1 }
 0x1bb   :  { %v364_v3 = vadd.f32 %v360_v2, %v28_v27 }
 0x1bd   :  { %367 = vadd.xlane.f32.xlu0 %v364_v3 }
 0x242   :  { %v366_v4 = vpop.xlane.xlu0 %365 }
 0x243   :  { %v370_v5 = vmul.f32 0.0078125, %v366_v4 }
 0x245   :  { %v372_v6 = vsub.f32 %v363_v1, %v370_v5 }
 0x246   :  { %v368_v7 = vpop.xlane.xlu0 %367 }
 0x247   :  { %v371_v8 = vmul.f32 0.0078125, %v368_v7  ;;  %v374_v9 = vmul.f32 %v372_v6, %v372_v6 }
 0x249   :  { %v373_v10 = vsub.f32 %v364_v3, %v371_v8  ;;  %376 = vadd.xlane.f32.xlu1 %v374_v9 }
 0x24b   :  { %v375_v11 = vmul.f32 %v373_v10, %v373_v10 }
 0x24d   :  { %378 = vadd.xlane.f32.xlu1 %v375_v11 }
 0x2d2   :  { %v377_v12 = vpop.xlane.xlu1 %376 }
 0x2d3   :  { %v380_v13 = vmul.f32 0.0078125, %v377_v12 }
 0x2d5   :  { %v382_v14 = vadd.f32 1e-05, %v380_v13 }
 0x2d6   :  { %v379_v15 = vpop.xlane.xlu1 %378 }
 0x2d7   :  { %510 = vrsqrt.f32 %v382_v14  ;;  %v381_v16 = vmul.f32 0.0078125, %v379_v15 }
 0x2d9   :  { %v383_v17 = vadd.f32 1e-05, %v381_v16 }
 0x2db   :  { %512 = vrsqrt.f32 %v383_v17 }
 0x2e4   :  { %v511_v18 = vpop.eup %510 }
 0x2e5   :  { %v386_v20 = vmul.f32 %v511_v18, %v372_v6 }
 0x2e7   :  { %v395_v22 = vmul.f32 %v445_v19, %v386_v20 }
 0x2e8   :  { %v513_v23 = vpop.eup %512 }
 0x2e9   :  { %v404_v24 = vadd.f32 %v446_v21, %v395_v22  ;;  %v387_v25 = vmul.f32 %v513_v23, %v373_v10 }
 0x2eb   :  { %406 = vst [vmem:[%s682_s7] sm:$0xff] %v404_v24  ;;  %v396_v26 = vmul.f32 %v445_v19, %v387_v25 }
 0x2ed   :  { %v405_v27 = vadd.f32 %v446_v21, %v396_v26 }
 0x2ef   :  { %407 = vst [vmem:[%s682_s7 + $0x8] sm:$0xff] %v405_v27 }

</bundles_post_ra>
